<compile_context>
chip_gen: v6e
topology: v6e:2x2x1
jax: 0.10.0
libtpu: 0.0.40
codegen_flags: <defaults>
</compile_context>

<pallas_src>
import math

import jax
import jax.numpy as jnp
from jax.experimental import pallas as pl
from jax.experimental.pallas import tpu as pltpu

# ---- small, module-consistent sizes -------------------------------------
S = 8            # sequence length
N = 2            # batch
H = 32           # hidden_dim
NH = 4           # num_transformer_heads
HD = H // NH     # head dim
LAYERS = 2       # num_transformer_layers (kept small)
VOCAB = 100      # vocab_size (kept small)
CLASSES = 3      # output_classes
LANES = 128      # lane-dense padded logits width
T = S * N        # flattened token count (seq-major: row = s*N + n)
LN_EPS = 1e-5
NEG_INF = -1e30


# =========================== fused Pallas kernel ===========================

def fused_forward_kernel(x_ref, pe_ref, bias_ref, hmask_ref,
                         wqkv_ref, bqkv_ref, wo_ref, bo_ref,
                         w1_ref, b1_ref, w2_ref, b2_ref,
                         g1_ref, be1_ref, g2_ref, be2_ref,
                         pw_ref, pb_ref, lw_ref, lb_ref,
                         o_ref):
    """Whole TransformerModule forward (eval) in a single Pallas invocation.

    x_ref    : (T, H)   embedded tokens (sqrt(H) pre-folded), seq-major flat
    pe_ref   : (T, H)   positional-encoding rows
    bias_ref : (T, T)   additive attention bias: cross-batch + key padding
    hmask_ref: (NH, H)  per-head feature-column masks
    per-layer weights are stacked along a leading LAYERS axis.
    """
    x = x_ref[...] + pe_ref[...]            # PositionalEncoding (dropout = id)
    bias = bias_ref[...]                    # (T, T)
    hms = hmask_ref[...]                    # (NH, H)

    def layernorm(v, g, b):
        mu = jnp.mean(v, axis=-1, keepdims=True)
        var = jnp.mean((v - mu) ** 2, axis=-1, keepdims=True)
        return (v - mu) * jax.lax.rsqrt(var + LN_EPS) * g + b

    for l in range(LAYERS):                 # static unroll; weights stay in VMEM
        # ---- fused QKV projection: one (T,H)@(H,3H) MXU dot ------------
        qkv = jnp.dot(x, wqkv_ref[l],
                      preferred_element_type=jnp.float32) + bqkv_ref[l]
        q = qkv[:, 0:H]                     # 1/sqrt(HD) already folded into Wq
        k = qkv[:, H:2 * H]
        v = qkv[:, 2 * H:3 * H]

        # ---- multi-head attention via head-column masking ---------------
        # Zeroing the other heads' columns of q (and of the p@v result via v)
        # makes the full-H contraction equal the per-head HD contraction, so
        # there is no per-batch loop, no (S,HD) activation slicing and no
        # lane-axis concatenation.  Cross-batch / padded keys get -1e30 bias
        # -> exp underflows to exactly 0.
        attn = jnp.zeros_like(x)
        for a in range(NH):
            hm = hms[a:a + 1, :]                                   # (1, H)
            sc = jnp.einsum('qd,kd->qk', q * hm, k,
                            preferred_element_type=jnp.float32)    # (T, T)
            sc = sc + bias
            sc = sc - jnp.max(sc, axis=-1, keepdims=True)
            p = jnp.exp(sc)
            p = p / jnp.sum(p, axis=-1, keepdims=True)
            attn = attn + jnp.dot(p, v * hm,
                                  preferred_element_type=jnp.float32)

        attn = jnp.dot(attn, wo_ref[l],
                       preferred_element_type=jnp.float32) + bo_ref[l]
        x = layernorm(x + attn, g1_ref[l], be1_ref[l])    # residual + norm1

        ff = jnp.maximum(
            jnp.dot(x, w1_ref[l], preferred_element_type=jnp.float32) + b1_ref[l],
            0.0)
        ff = jnp.dot(ff, w2_ref[l],
                     preferred_element_type=jnp.float32) + b2_ref[l]
        x = layernorm(x + ff, g2_ref[l], be2_ref[l])      # residual + norm2

    # ---- PoolingModule (first token -> Linear -> ReLU) + logits ----------
    first = x[0:N, :]                        # seq-major: rows 0..N-1 are s == 0
    pooled = jnp.maximum(
        jnp.dot(first, pw_ref[...], preferred_element_type=jnp.float32)
        + pb_ref[...], 0.0)
    # lane-dense (N, 128) store; logits weights are zero-padded past CLASSES
    o_ref[...] = jnp.dot(pooled, lw_ref[...],
                         preferred_element_type=jnp.float32) + lb_ref[...]


# =========================== pallas_call wrapper ===========================

def _vmem_spec():
    return pl.BlockSpec(memory_space=pltpu.MemorySpace.VMEM)


def transformer_forward(ids, params):
    """Full TransformerModule.forward (eval). ids: (S, N) int32 -> (N, CLASSES)."""
    # EmbeddingModule (sqrt(H) folded into the table) + seq-major flatten.
    x_tok = params['emb_scaled'][ids].reshape(T, H)

    # MaskingModule: (ids == 0).T -> key-padding mask, fused with the
    # cross-batch block mask into a single additive (T, T) attention bias.
    pad = (ids.reshape(-1) == 0)                         # row r = s*N + n
    r = jnp.arange(T)
    same_batch = (r[:, None] % N) == (r[None, :] % N)
    bias = jnp.where(same_batch & jnp.logical_not(pad)[None, :],
                     0.0, NEG_INF).astype(jnp.float32)

    args = (x_tok, PE_ROWS, bias, HEAD_MASK,
            params['wqkv'], params['bqkv'], params['wo'], params['bo'],
            params['w1'], params['b1'], params['w2'], params['b2'],
            params['g1'], params['be1'], params['g2'], params['be2'],
            params['pw'], params['pb'], params['lw_pad'], params['lb_pad'])

    out_pad = pl.pallas_call(
        fused_forward_kernel,
        out_shape=jax.ShapeDtypeStruct((N, LANES), jnp.float32),
        in_specs=[_vmem_spec() for _ in args],
        out_specs=_vmem_spec(),
    )(*args)
    return out_pad[:, :CLASSES]


# =========================== parameters / constants ========================

def positional_encoding_table(max_len, d_model):
    pos = jnp.arange(max_len, dtype=jnp.float32)[:, None]
    div = jnp.exp(jnp.arange(0, d_model, 2, dtype=jnp.float32)
                  * (-math.log(10000.0) / d_model))
    pe = jnp.zeros((max_len, d_model), jnp.float32)
    pe = pe.at[:, 0::2].set(jnp.sin(pos * div))
    pe = pe.at[:, 1::2].set(jnp.cos(pos * div))
    return pe  # (max_len, d_model)


PE_TABLE = positional_encoding_table(5000, H)
PE_ROWS = jnp.repeat(PE_TABLE[:S], N, axis=0)            # (T, H): row s*N+n -> pe[s]
HEAD_MASK = (jnp.arange(H)[None, :] // HD
             == jnp.arange(NH)[:, None]).astype(jnp.float32)   # (NH, H)


def _dense_init(key, fan_in, fan_out):
    # PyTorch-style uniform(-1/sqrt(fan_in), 1/sqrt(fan_in)) init (deterministic)
    bound = 1.0 / math.sqrt(fan_in)
    kw, kb = jax.random.split(key)
    w = jax.random.uniform(kw, (fan_out, fan_in), jnp.float32, -bound, bound)
    b = jax.random.uniform(kb, (fan_out,), jnp.float32, -bound, bound)
    return w, b


def init_params(key):
    keys = jax.random.split(key, 3 + LAYERS)
    # embedding: uniform(-0.1, 0.1) per embed_init_scaling; fold sqrt(H) now
    emb = jax.random.uniform(keys[0], (VOCAB, H), jnp.float32, -0.1, 0.1)

    qscale = 1.0 / math.sqrt(HD)
    wqkv_l, bqkv_l, wo_l, bo_l, w1_l, b1_l, w2_l, b2_l = ([] for _ in range(8))
    for l in range(LAYERS):
        ks = jax.random.split(keys[1 + l], 4)
        in_w, in_b = _dense_init(ks[0], H, 3 * H)        # in_proj (3H, H), (3H,)
        wqkv = in_w.T                                    # (H, 3H) = [Wq | Wk | Wv]
        wqkv = wqkv.at[:, :H].multiply(qscale)           # fold 1/sqrt(HD) into q
        bqkv = in_b.at[:H].multiply(qscale)[None, :]     # (1, 3H)
        wo, bo = _dense_init(ks[1], H, H)
        w1, b1 = _dense_init(ks[2], H, H)                # dim_feedforward == hidden_dim
        w2, b2 = _dense_init(ks[3], H, H)
        wqkv_l.append(wqkv); bqkv_l.append(bqkv)
        wo_l.append(wo.T);   bo_l.append(bo[None, :])
        w1_l.append(w1.T);   b1_l.append(b1[None, :])
        w2_l.append(w2.T);   b2_l.append(b2[None, :])

    pw, pb = _dense_init(keys[1 + LAYERS], H, H)          # PoolingModule.linear
    lw, lb = _dense_init(keys[2 + LAYERS], H, CLASSES)    # logits (zero-pad lanes)
    lw_pad = jnp.zeros((H, LANES), jnp.float32).at[:, :CLASSES].set(lw.T)
    lb_pad = jnp.zeros((1, LANES), jnp.float32).at[0, :CLASSES].set(lb)

    return dict(
        emb_scaled=emb * math.sqrt(H),
        wqkv=jnp.stack(wqkv_l), bqkv=jnp.stack(bqkv_l),
        wo=jnp.stack(wo_l), bo=jnp.stack(bo_l),
        w1=jnp.stack(w1_l), b1=jnp.stack(b1_l),
        w2=jnp.stack(w2_l), b2=jnp.stack(b2_l),
        g1=jnp.ones((LAYERS, 1, H)), be1=jnp.zeros((LAYERS, 1, H)),
        g2=jnp.ones((LAYERS, 1, H)), be2=jnp.zeros((LAYERS, 1, H)),
        pw=pw.T, pb=pb[None, :], lw_pad=lw_pad, lb_pad=lb_pad,
    )


# =========================== pure-JAX reference ============================

def _ref_ln(x, g, b):
    mu = jnp.mean(x, axis=-1, keepdims=True)
    var = jnp.mean((x - mu) ** 2, axis=-1, keepdims=True)
    return (x - mu) * jax.lax.rsqrt(var + LN_EPS) * g + b


def reference_forward(ids, params):
    """Standard per-batch/per-head MHA formulation on the same folded params."""
    mask_bias = jnp.where(ids.T == 0, NEG_INF, 0.0).astype(jnp.float32)  # (N, S)
    x = params['emb_scaled'][ids] + PE_TABLE[:S][:, None, :]             # (S, N, H)
    for l in range(LAYERS):
        x2 = x.reshape(S * N, H)
        qkv = x2 @ params['wqkv'][l] + params['bqkv'][l]
        q = qkv[:, :H].reshape(S, N, NH, HD)          # 1/sqrt(HD) folded into Wq
        k = qkv[:, H:2 * H].reshape(S, N, NH, HD)
        v = qkv[:, 2 * H:].reshape(S, N, NH, HD)
        sc = jnp.einsum('qnhd,knhd->nhqk', q, k)
        sc = sc + mask_bias[:, None, None, :]
        p = jax.nn.softmax(sc, axis=-1)
        attn = jnp.einsum('nhqk,knhd->qnhd', p, v).reshape(S * N, H)
        attn = attn @ params['wo'][l] + params['bo'][l]
        y = _ref_ln(x2 + attn, params['g1'][l], params['be1'][l])
        ff = (jax.nn.relu(y @ params['w1'][l] + params['b1'][l])
              @ params['w2'][l] + params['b2'][l])
        x = _ref_ln(y + ff, params['g2'][l], params['be2'][l]).reshape(S, N, H)

    pooled = jax.nn.relu(x[0] @ params['pw'] + params['pb'])
    return (pooled @ params['lw_pad'] + params['lb_pad'])[:, :CLASSES]


# ================================= main ====================================

if __name__ == "__main__":
    key = jax.random.PRNGKey(0)
    k_ids, k_par = jax.random.split(key)

    params = init_params(k_par)

    # token ids (S, N), with a couple of explicit pad (0) tokens for the mask
    ids = jax.random.randint(k_ids, (S, N), 1, VOCAB, dtype=jnp.int32)
    ids = ids.at[S - 2, 0].set(0)
    ids = ids.at[S - 1, 1].set(0)

    fwd = jax.jit(transformer_forward)
    out = jax.block_until_ready(fwd(ids, params))
    ref = jax.block_until_ready(reference_forward(ids, params))

    assert out.shape == (N, CLASSES), out.shape
    assert jnp.allclose(out, ref, rtol=2e-4, atol=2e-4), (out, ref)

    print("KERNEL_OK")
</pallas_src>

<mosaic_0001>
module attributes {stable_mosaic.version = 11 : i64} {
  func.func @fused_forward_kernel(%arg0: memref<16x32xf32, #tpu.memory_space<vmem>>, %arg1: memref<16x32xf32, #tpu.memory_space<vmem>>, %arg2: memref<16x16xf32, #tpu.memory_space<vmem>>, %arg3: memref<4x32xf32, #tpu.memory_space<vmem>>, %arg4: memref<2x32x96xf32, #tpu.memory_space<vmem>>, %arg5: memref<2x1x96xf32, #tpu.memory_space<vmem>>, %arg6: memref<2x32x32xf32, #tpu.memory_space<vmem>>, %arg7: memref<2x1x32xf32, #tpu.memory_space<vmem>>, %arg8: memref<2x32x32xf32, #tpu.memory_space<vmem>>, %arg9: memref<2x1x32xf32, #tpu.memory_space<vmem>>, %arg10: memref<2x32x32xf32, #tpu.memory_space<vmem>>, %arg11: memref<2x1x32xf32, #tpu.memory_space<vmem>>, %arg12: memref<2x1x32xf32, #tpu.memory_space<vmem>>, %arg13: memref<2x1x32xf32, #tpu.memory_space<vmem>>, %arg14: memref<2x1x32xf32, #tpu.memory_space<vmem>>, %arg15: memref<2x1x32xf32, #tpu.memory_space<vmem>>, %arg16: memref<32x32xf32, #tpu.memory_space<vmem>>, %arg17: memref<1x32xf32, #tpu.memory_space<vmem>>, %arg18: memref<32x128xf32, #tpu.memory_space<vmem>>, %arg19: memref<1x128xf32, #tpu.memory_space<vmem>>, %arg20: memref<2x128xf32, #tpu.memory_space<vmem>>) attributes {dimension_semantics = [], scalar_prefetch = 0 : i64, scratch_operands = 0 : i64, tpu.core_type = #tpu.core_type<tc>} {
    %c0 = arith.constant 0 : index
    %c0_0 = arith.constant 0 : index
    %0 = vector.load %arg0[%c0, %c0_0] : memref<16x32xf32, #tpu.memory_space<vmem>>, vector<16x32xf32>
    %c0_1 = arith.constant 0 : index
    %c0_2 = arith.constant 0 : index
    %1 = vector.load %arg1[%c0_1, %c0_2] : memref<16x32xf32, #tpu.memory_space<vmem>>, vector<16x32xf32>
    %2 = arith.addf %0, %1 : vector<16x32xf32>
    %c0_3 = arith.constant 0 : index
    %c0_4 = arith.constant 0 : index
    %3 = vector.load %arg2[%c0_3, %c0_4] : memref<16x16xf32, #tpu.memory_space<vmem>>, vector<16x16xf32>
    %c0_5 = arith.constant 0 : index
    %c0_6 = arith.constant 0 : index
    %4 = vector.load %arg3[%c0_5, %c0_6] : memref<4x32xf32, #tpu.memory_space<vmem>>, vector<4x32xf32>
    %c0_7 = arith.constant 0 : index
    %c0_8 = arith.constant 0 : index
    %c0_9 = arith.constant 0 : index
    %5 = vector.load %arg4[%c0_7, %c0_8, %c0_9] : memref<2x32x96xf32, #tpu.memory_space<vmem>>, vector<1x32x96xf32>
    %6 = vector.shape_cast %5 : vector<1x32x96xf32> to vector<32x96xf32>
    %cst = arith.constant dense<0.000000e+00> : vector<16x96xf32>
    %7 = tpu.matmul %2, %6, %cst {dimension_numbers = #tpu.dot_dimension_numbers<[1], [0], [0], [1], [0, 0, 1, 1], [], []>} : vector<16x32xf32>, vector<32x96xf32>, vector<16x96xf32> -> vector<16x96xf32>
    %c0_10 = arith.constant 0 : index
    %c0_11 = arith.constant 0 : index
    %c0_12 = arith.constant 0 : index
    %8 = vector.load %arg5[%c0_10, %c0_11, %c0_12] : memref<2x1x96xf32, #tpu.memory_space<vmem>>, vector<1x1x96xf32>
    %9 = vector.shape_cast %8 : vector<1x1x96xf32> to vector<1x96xf32>
    %10 = vector.broadcast %9 : vector<1x96xf32> to vector<16x96xf32>
    %11 = arith.addf %7, %10 : vector<16x96xf32>
    %12 = vector.extract_strided_slice %11 {offsets = [0, 0], sizes = [16, 32], strides = [1, 1]} : vector<16x96xf32> to vector<16x32xf32>
    %13 = vector.extract_strided_slice %11 {offsets = [0, 32], sizes = [16, 32], strides = [1, 1]} : vector<16x96xf32> to vector<16x32xf32>
    %14 = vector.extract_strided_slice %11 {offsets = [0, 64], sizes = [16, 32], strides = [1, 1]} : vector<16x96xf32> to vector<16x32xf32>
    %cst_13 = arith.constant 0.000000e+00 : f32
    %15 = vector.broadcast %cst_13 : f32 to vector<16x32xf32>
    %16 = vector.extract_strided_slice %4 {offsets = [0, 0], sizes = [1, 32], strides = [1, 1]} : vector<4x32xf32> to vector<1x32xf32>
    %17 = vector.broadcast %16 : vector<1x32xf32> to vector<16x32xf32>
    %18 = arith.mulf %12, %17 : vector<16x32xf32>
    "tpu.trace_start"() <{level = 10 : i32, message = "qd,kd->qk"}> : () -> ()
    %cst_14 = arith.constant dense<0.000000e+00> : vector<16x16xf32>
    %19 = tpu.matmul %18, %13, %cst_14 {dimension_numbers = #tpu.dot_dimension_numbers<[1], [1], [0], [0], [0, 0, 1, 0], [], []>} : vector<16x32xf32>, vector<16x32xf32>, vector<16x16xf32> -> vector<16x16xf32>
    "tpu.trace_stop"() : () -> ()
    %20 = arith.addf %19, %3 : vector<16x16xf32>
    %cst_15 = arith.constant dense<0xFF800000> : vector<16xf32>
    %21 = vector.multi_reduction <maximumf>, %20, %cst_15 [1] : vector<16x16xf32> to vector<16xf32>
    %22 = vector.shape_cast %21 : vector<16xf32> to vector<16x1xf32>
    %23 = vector.broadcast %22 : vector<16x1xf32> to vector<16x16xf32>
    %24 = arith.subf %20, %23 : vector<16x16xf32>
    %25 = math.exp %24 : vector<16x16xf32>
    %cst_16 = arith.constant dense<0.000000e+00> : vector<16xf32>
    %26 = vector.multi_reduction <add>, %25, %cst_16 [1] : vector<16x16xf32> to vector<16xf32>
    %27 = vector.shape_cast %26 : vector<16xf32> to vector<16x1xf32>
    %28 = vector.broadcast %27 : vector<16x1xf32> to vector<16x16xf32>
    %29 = arith.divf %25, %28 : vector<16x16xf32>
    %30 = vector.broadcast %16 : vector<1x32xf32> to vector<16x32xf32>
    %31 = arith.mulf %14, %30 : vector<16x32xf32>
    %cst_17 = arith.constant dense<0.000000e+00> : vector<16x32xf32>
    %32 = tpu.matmul %29, %31, %cst_17 {dimension_numbers = #tpu.dot_dimension_numbers<[1], [0], [0], [1], [0, 0, 1, 1], [], []>} : vector<16x16xf32>, vector<16x32xf32>, vector<16x32xf32> -> vector<16x32xf32>
    %33 = arith.addf %15, %32 : vector<16x32xf32>
    %34 = vector.extract_strided_slice %4 {offsets = [1, 0], sizes = [1, 32], strides = [1, 1]} : vector<4x32xf32> to vector<1x32xf32>
    %35 = vector.broadcast %34 : vector<1x32xf32> to vector<16x32xf32>
    %36 = arith.mulf %12, %35 : vector<16x32xf32>
    "tpu.trace_start"() <{level = 10 : i32, message = "qd,kd->qk"}> : () -> ()
    %cst_18 = arith.constant dense<0.000000e+00> : vector<16x16xf32>
    %37 = tpu.matmul %36, %13, %cst_18 {dimension_numbers = #tpu.dot_dimension_numbers<[1], [1], [0], [0], [0, 0, 1, 0], [], []>} : vector<16x32xf32>, vector<16x32xf32>, vector<16x16xf32> -> vector<16x16xf32>
    "tpu.trace_stop"() : () -> ()
    %38 = arith.addf %37, %3 : vector<16x16xf32>
    %cst_19 = arith.constant dense<0xFF800000> : vector<16xf32>
    %39 = vector.multi_reduction <maximumf>, %38, %cst_19 [1] : vector<16x16xf32> to vector<16xf32>
    %40 = vector.shape_cast %39 : vector<16xf32> to vector<16x1xf32>
    %41 = vector.broadcast %40 : vector<16x1xf32> to vector<16x16xf32>
    %42 = arith.subf %38, %41 : vector<16x16xf32>
    %43 = math.exp %42 : vector<16x16xf32>
    %cst_20 = arith.constant dense<0.000000e+00> : vector<16xf32>
    %44 = vector.multi_reduction <add>, %43, %cst_20 [1] : vector<16x16xf32> to vector<16xf32>
    %45 = vector.shape_cast %44 : vector<16xf32> to vector<16x1xf32>
    %46 = vector.broadcast %45 : vector<16x1xf32> to vector<16x16xf32>
    %47 = arith.divf %43, %46 : vector<16x16xf32>
    %48 = vector.broadcast %34 : vector<1x32xf32> to vector<16x32xf32>
    %49 = arith.mulf %14, %48 : vector<16x32xf32>
    %cst_21 = arith.constant dense<0.000000e+00> : vector<16x32xf32>
    %50 = tpu.matmul %47, %49, %cst_21 {dimension_numbers = #tpu.dot_dimension_numbers<[1], [0], [0], [1], [0, 0, 1, 1], [], []>} : vector<16x16xf32>, vector<16x32xf32>, vector<16x32xf32> -> vector<16x32xf32>
    %51 = arith.addf %33, %50 : vector<16x32xf32>
    %52 = vector.extract_strided_slice %4 {offsets = [2, 0], sizes = [1, 32], strides = [1, 1]} : vector<4x32xf32> to vector<1x32xf32>
    %53 = vector.broadcast %52 : vector<1x32xf32> to vector<16x32xf32>
    %54 = arith.mulf %12, %53 : vector<16x32xf32>
    "tpu.trace_start"() <{level = 10 : i32, message = "qd,kd->qk"}> : () -> ()
    %cst_22 = arith.constant dense<0.000000e+00> : vector<16x16xf32>
    %55 = tpu.matmul %54, %13, %cst_22 {dimension_numbers = #tpu.dot_dimension_numbers<[1], [1], [0], [0], [0, 0, 1, 0], [], []>} : vector<16x32xf32>, vector<16x32xf32>, vector<16x16xf32> -> vector<16x16xf32>
    "tpu.trace_stop"() : () -> ()
    %56 = arith.addf %55, %3 : vector<16x16xf32>
    %cst_23 = arith.constant dense<0xFF800000> : vector<16xf32>
    %57 = vector.multi_reduction <maximumf>, %56, %cst_23 [1] : vector<16x16xf32> to vector<16xf32>
    %58 = vector.shape_cast %57 : vector<16xf32> to vector<16x1xf32>
    %59 = vector.broadcast %58 : vector<16x1xf32> to vector<16x16xf32>
    %60 = arith.subf %56, %59 : vector<16x16xf32>
    %61 = math.exp %60 : vector<16x16xf32>
    %cst_24 = arith.constant dense<0.000000e+00> : vector<16xf32>
    %62 = vector.multi_reduction <add>, %61, %cst_24 [1] : vector<16x16xf32> to vector<16xf32>
    %63 = vector.shape_cast %62 : vector<16xf32> to vector<16x1xf32>
    %64 = vector.broadcast %63 : vector<16x1xf32> to vector<16x16xf32>
    %65 = arith.divf %61, %64 : vector<16x16xf32>
    %66 = vector.broadcast %52 : vector<1x32xf32> to vector<16x32xf32>
    %67 = arith.mulf %14, %66 : vector<16x32xf32>
    %cst_25 = arith.constant dense<0.000000e+00> : vector<16x32xf32>
    %68 = tpu.matmul %65, %67, %cst_25 {dimension_numbers = #tpu.dot_dimension_numbers<[1], [0], [0], [1], [0, 0, 1, 1], [], []>} : vector<16x16xf32>, vector<16x32xf32>, vector<16x32xf32> -> vector<16x32xf32>
    %69 = arith.addf %51, %68 : vector<16x32xf32>
    %70 = vector.extract_strided_slice %4 {offsets = [3, 0], sizes = [1, 32], strides = [1, 1]} : vector<4x32xf32> to vector<1x32xf32>
    %71 = vector.broadcast %70 : vector<1x32xf32> to vector<16x32xf32>
    %72 = arith.mulf %12, %71 : vector<16x32xf32>
    "tpu.trace_start"() <{level = 10 : i32, message = "qd,kd->qk"}> : () -> ()
    %cst_26 = arith.constant dense<0.000000e+00> : vector<16x16xf32>
    %73 = tpu.matmul %72, %13, %cst_26 {dimension_numbers = #tpu.dot_dimension_numbers<[1], [1], [0], [0], [0, 0, 1, 0], [], []>} : vector<16x32xf32>, vector<16x32xf32>, vector<16x16xf32> -> vector<16x16xf32>
    "tpu.trace_stop"() : () -> ()
    %74 = arith.addf %73, %3 : vector<16x16xf32>
    %cst_27 = arith.constant dense<0xFF800000> : vector<16xf32>
    %75 = vector.multi_reduction <maximumf>, %74, %cst_27 [1] : vector<16x16xf32> to vector<16xf32>
    %76 = vector.shape_cast %75 : vector<16xf32> to vector<16x1xf32>
    %77 = vector.broadcast %76 : vector<16x1xf32> to vector<16x16xf32>
    %78 = arith.subf %74, %77 : vector<16x16xf32>
    %79 = math.exp %78 : vector<16x16xf32>
    %cst_28 = arith.constant dense<0.000000e+00> : vector<16xf32>
    %80 = vector.multi_reduction <add>, %79, %cst_28 [1] : vector<16x16xf32> to vector<16xf32>
    %81 = vector.shape_cast %80 : vector<16xf32> to vector<16x1xf32>
    %82 = vector.broadcast %81 : vector<16x1xf32> to vector<16x16xf32>
    %83 = arith.divf %79, %82 : vector<16x16xf32>
    %84 = vector.broadcast %70 : vector<1x32xf32> to vector<16x32xf32>
    %85 = arith.mulf %14, %84 : vector<16x32xf32>
    %cst_29 = arith.constant dense<0.000000e+00> : vector<16x32xf32>
    %86 = tpu.matmul %83, %85, %cst_29 {dimension_numbers = #tpu.dot_dimension_numbers<[1], [0], [0], [1], [0, 0, 1, 1], [], []>} : vector<16x16xf32>, vector<16x32xf32>, vector<16x32xf32> -> vector<16x32xf32>
    %87 = arith.addf %69, %86 : vector<16x32xf32>
    %c0_30 = arith.constant 0 : index
    %c0_31 = arith.constant 0 : index
    %c0_32 = arith.constant 0 : index
    %88 = vector.load %arg6[%c0_30, %c0_31, %c0_32] : memref<2x32x32xf32, #tpu.memory_space<vmem>>, vector<1x32x32xf32>
    %89 = vector.shape_cast %88 : vector<1x32x32xf32> to vector<32x32xf32>
    %cst_33 = arith.constant dense<0.000000e+00> : vector<16x32xf32>
    %90 = tpu.matmul %87, %89, %cst_33 {dimension_numbers = #tpu.dot_dimension_numbers<[1], [0], [0], [1], [0, 0, 1, 1], [], []>} : vector<16x32xf32>, vector<32x32xf32>, vector<16x32xf32> -> vector<16x32xf32>
    %c0_34 = arith.constant 0 : index
    %c0_35 = arith.constant 0 : index
    %c0_36 = arith.constant 0 : index
    %91 = vector.load %arg7[%c0_34, %c0_35, %c0_36] : memref<2x1x32xf32, #tpu.memory_space<vmem>>, vector<1x1x32xf32>
    %92 = vector.shape_cast %91 : vector<1x1x32xf32> to vector<1x32xf32>
    %93 = vector.broadcast %92 : vector<1x32xf32> to vector<16x32xf32>
    %94 = arith.addf %90, %93 : vector<16x32xf32>
    %95 = arith.addf %2, %94 : vector<16x32xf32>
    %c0_37 = arith.constant 0 : index
    %c0_38 = arith.constant 0 : index
    %c0_39 = arith.constant 0 : index
    %96 = vector.load %arg12[%c0_37, %c0_38, %c0_39] : memref<2x1x32xf32, #tpu.memory_space<vmem>>, vector<1x1x32xf32>
    %97 = vector.shape_cast %96 : vector<1x1x32xf32> to vector<1x32xf32>
    %c0_40 = arith.constant 0 : index
    %c0_41 = arith.constant 0 : index
    %c0_42 = arith.constant 0 : index
    %98 = vector.load %arg13[%c0_40, %c0_41, %c0_42] : memref<2x1x32xf32, #tpu.memory_space<vmem>>, vector<1x1x32xf32>
    %99 = vector.shape_cast %98 : vector<1x1x32xf32> to vector<1x32xf32>
    %cst_43 = arith.constant dense<0.000000e+00> : vector<16xf32>
    %100 = vector.multi_reduction <add>, %95, %cst_43 [1] : vector<16x32xf32> to vector<16xf32>
    %101 = vector.shape_cast %100 : vector<16xf32> to vector<16x1xf32>
    %cst_44 = arith.constant 3.200000e+01 : f32
    %102 = vector.broadcast %cst_44 : f32 to vector<16x1xf32>
    %103 = arith.divf %101, %102 : vector<16x1xf32>
    %104 = vector.broadcast %103 : vector<16x1xf32> to vector<16x32xf32>
    %105 = arith.subf %95, %104 : vector<16x32xf32>
    %106 = arith.mulf %105, %105 : vector<16x32xf32>
    %cst_45 = arith.constant dense<0.000000e+00> : vector<16xf32>
    %107 = vector.multi_reduction <add>, %106, %cst_45 [1] : vector<16x32xf32> to vector<16xf32>
    %108 = vector.shape_cast %107 : vector<16xf32> to vector<16x1xf32>
    %cst_46 = arith.constant 3.200000e+01 : f32
    %109 = vector.broadcast %cst_46 : f32 to vector<16x1xf32>
    %110 = arith.divf %108, %109 : vector<16x1xf32>
    %111 = vector.broadcast %103 : vector<16x1xf32> to vector<16x32xf32>
    %112 = arith.subf %95, %111 : vector<16x32xf32>
    %cst_47 = arith.constant 9.99999974E-6 : f32
    %113 = vector.broadcast %cst_47 : f32 to vector<16x1xf32>
    %114 = arith.addf %110, %113 : vector<16x1xf32>
    %115 = math.rsqrt %114 : vector<16x1xf32>
    %116 = vector.broadcast %115 : vector<16x1xf32> to vector<16x32xf32>
    %117 = arith.mulf %112, %116 : vector<16x32xf32>
    %118 = vector.broadcast %97 : vector<1x32xf32> to vector<16x32xf32>
    %119 = arith.mulf %117, %118 : vector<16x32xf32>
    %120 = vector.broadcast %99 : vector<1x32xf32> to vector<16x32xf32>
    %121 = arith.addf %119, %120 : vector<16x32xf32>
    %c0_48 = arith.constant 0 : index
    %c0_49 = arith.constant 0 : index
    %c0_50 = arith.constant 0 : index
    %122 = vector.load %arg8[%c0_48, %c0_49, %c0_50] : memref<2x32x32xf32, #tpu.memory_space<vmem>>, vector<1x32x32xf32>
    %123 = vector.shape_cast %122 : vector<1x32x32xf32> to vector<32x32xf32>
    %cst_51 = arith.constant dense<0.000000e+00> : vector<16x32xf32>
    %124 = tpu.matmul %121, %123, %cst_51 {dimension_numbers = #tpu.dot_dimension_numbers<[1], [0], [0], [1], [0, 0, 1, 1], [], []>} : vector<16x32xf32>, vector<32x32xf32>, vector<16x32xf32> -> vector<16x32xf32>
    %c0_52 = arith.constant 0 : index
    %c0_53 = arith.constant 0 : index
    %c0_54 = arith.constant 0 : index
    %125 = vector.load %arg9[%c0_52, %c0_53, %c0_54] : memref<2x1x32xf32, #tpu.memory_space<vmem>>, vector<1x1x32xf32>
    %126 = vector.shape_cast %125 : vector<1x1x32xf32> to vector<1x32xf32>
    %127 = vector.broadcast %126 : vector<1x32xf32> to vector<16x32xf32>
    %128 = arith.addf %124, %127 : vector<16x32xf32>
    %cst_55 = arith.constant 0.000000e+00 : f32
    %129 = vector.broadcast %cst_55 : f32 to vector<16x32xf32>
    %130 = arith.maximumf %128, %129 : vector<16x32xf32>
    %c0_56 = arith.constant 0 : index
    %c0_57 = arith.constant 0 : index
    %c0_58 = arith.constant 0 : index
    %131 = vector.load %arg10[%c0_56, %c0_57, %c0_58] : memref<2x32x32xf32, #tpu.memory_space<vmem>>, vector<1x32x32xf32>
    %132 = vector.shape_cast %131 : vector<1x32x32xf32> to vector<32x32xf32>
    %cst_59 = arith.constant dense<0.000000e+00> : vector<16x32xf32>
    %133 = tpu.matmul %130, %132, %cst_59 {dimension_numbers = #tpu.dot_dimension_numbers<[1], [0], [0], [1], [0, 0, 1, 1], [], []>} : vector<16x32xf32>, vector<32x32xf32>, vector<16x32xf32> -> vector<16x32xf32>
    %c0_60 = arith.constant 0 : index
    %c0_61 = arith.constant 0 : index
    %c0_62 = arith.constant 0 : index
    %134 = vector.load %arg11[%c0_60, %c0_61, %c0_62] : memref<2x1x32xf32, #tpu.memory_space<vmem>>, vector<1x1x32xf32>
    %135 = vector.shape_cast %134 : vector<1x1x32xf32> to vector<1x32xf32>
    %136 = vector.broadcast %135 : vector<1x32xf32> to vector<16x32xf32>
    %137 = arith.addf %133, %136 : vector<16x32xf32>
    %138 = arith.addf %121, %137 : vector<16x32xf32>
    %c0_63 = arith.constant 0 : index
    %c0_64 = arith.constant 0 : index
    %c0_65 = arith.constant 0 : index
    %139 = vector.load %arg14[%c0_63, %c0_64, %c0_65] : memref<2x1x32xf32, #tpu.memory_space<vmem>>, vector<1x1x32xf32>
    %140 = vector.shape_cast %139 : vector<1x1x32xf32> to vector<1x32xf32>
    %c0_66 = arith.constant 0 : index
    %c0_67 = arith.constant 0 : index
    %c0_68 = arith.constant 0 : index
    %141 = vector.load %arg15[%c0_66, %c0_67, %c0_68] : memref<2x1x32xf32, #tpu.memory_space<vmem>>, vector<1x1x32xf32>
    %142 = vector.shape_cast %141 : vector<1x1x32xf32> to vector<1x32xf32>
    %cst_69 = arith.constant dense<0.000000e+00> : vector<16xf32>
    %143 = vector.multi_reduction <add>, %138, %cst_69 [1] : vector<16x32xf32> to vector<16xf32>
    %144 = vector.shape_cast %143 : vector<16xf32> to vector<16x1xf32>
    %cst_70 = arith.constant 3.200000e+01 : f32
    %145 = vector.broadcast %cst_70 : f32 to vector<16x1xf32>
    %146 = arith.divf %144, %145 : vector<16x1xf32>
    %147 = vector.broadcast %146 : vector<16x1xf32> to vector<16x32xf32>
    %148 = arith.subf %138, %147 : vector<16x32xf32>
    %149 = arith.mulf %148, %148 : vector<16x32xf32>
    %cst_71 = arith.constant dense<0.000000e+00> : vector<16xf32>
    %150 = vector.multi_reduction <add>, %149, %cst_71 [1] : vector<16x32xf32> to vector<16xf32>
    %151 = vector.shape_cast %150 : vector<16xf32> to vector<16x1xf32>
    %cst_72 = arith.constant 3.200000e+01 : f32
    %152 = vector.broadcast %cst_72 : f32 to vector<16x1xf32>
    %153 = arith.divf %151, %152 : vector<16x1xf32>
    %154 = vector.broadcast %146 : vector<16x1xf32> to vector<16x32xf32>
    %155 = arith.subf %138, %154 : vector<16x32xf32>
    %cst_73 = arith.constant 9.99999974E-6 : f32
    %156 = vector.broadcast %cst_73 : f32 to vector<16x1xf32>
    %157 = arith.addf %153, %156 : vector<16x1xf32>
    %158 = math.rsqrt %157 : vector<16x1xf32>
    %159 = vector.broadcast %158 : vector<16x1xf32> to vector<16x32xf32>
    %160 = arith.mulf %155, %159 : vector<16x32xf32>
    %161 = vector.broadcast %140 : vector<1x32xf32> to vector<16x32xf32>
    %162 = arith.mulf %160, %161 : vector<16x32xf32>
    %163 = vector.broadcast %142 : vector<1x32xf32> to vector<16x32xf32>
    %164 = arith.addf %162, %163 : vector<16x32xf32>
    %c1 = arith.constant 1 : index
    %c0_74 = arith.constant 0 : index
    %c0_75 = arith.constant 0 : index
    %165 = vector.load %arg4[%c1, %c0_74, %c0_75] : memref<2x32x96xf32, #tpu.memory_space<vmem>>, vector<1x32x96xf32>
    %166 = vector.shape_cast %165 : vector<1x32x96xf32> to vector<32x96xf32>
    %cst_76 = arith.constant dense<0.000000e+00> : vector<16x96xf32>
    %167 = tpu.matmul %164, %166, %cst_76 {dimension_numbers = #tpu.dot_dimension_numbers<[1], [0], [0], [1], [0, 0, 1, 1], [], []>} : vector<16x32xf32>, vector<32x96xf32>, vector<16x96xf32> -> vector<16x96xf32>
    %c1_77 = arith.constant 1 : index
    %c0_78 = arith.constant 0 : index
    %c0_79 = arith.constant 0 : index
    %168 = vector.load %arg5[%c1_77, %c0_78, %c0_79] : memref<2x1x96xf32, #tpu.memory_space<vmem>>, vector<1x1x96xf32>
    %169 = vector.shape_cast %168 : vector<1x1x96xf32> to vector<1x96xf32>
    %170 = vector.broadcast %169 : vector<1x96xf32> to vector<16x96xf32>
    %171 = arith.addf %167, %170 : vector<16x96xf32>
    %172 = vector.extract_strided_slice %171 {offsets = [0, 0], sizes = [16, 32], strides = [1, 1]} : vector<16x96xf32> to vector<16x32xf32>
    %173 = vector.extract_strided_slice %171 {offsets = [0, 32], sizes = [16, 32], strides = [1, 1]} : vector<16x96xf32> to vector<16x32xf32>
    %174 = vector.extract_strided_slice %171 {offsets = [0, 64], sizes = [16, 32], strides = [1, 1]} : vector<16x96xf32> to vector<16x32xf32>
    %cst_80 = arith.constant 0.000000e+00 : f32
    %175 = vector.broadcast %cst_80 : f32 to vector<16x32xf32>
    %176 = vector.extract_strided_slice %4 {offsets = [0, 0], sizes = [1, 32], strides = [1, 1]} : vector<4x32xf32> to vector<1x32xf32>
    %177 = vector.broadcast %176 : vector<1x32xf32> to vector<16x32xf32>
    %178 = arith.mulf %172, %177 : vector<16x32xf32>
    "tpu.trace_start"() <{level = 10 : i32, message = "qd,kd->qk"}> : () -> ()
    %cst_81 = arith.constant dense<0.000000e+00> : vector<16x16xf32>
    %179 = tpu.matmul %178, %173, %cst_81 {dimension_numbers = #tpu.dot_dimension_numbers<[1], [1], [0], [0], [0, 0, 1, 0], [], []>} : vector<16x32xf32>, vector<16x32xf32>, vector<16x16xf32> -> vector<16x16xf32>
    "tpu.trace_stop"() : () -> ()
    %180 = arith.addf %179, %3 : vector<16x16xf32>
    %cst_82 = arith.constant dense<0xFF800000> : vector<16xf32>
    %181 = vector.multi_reduction <maximumf>, %180, %cst_82 [1] : vector<16x16xf32> to vector<16xf32>
    %182 = vector.shape_cast %181 : vector<16xf32> to vector<16x1xf32>
    %183 = vector.broadcast %182 : vector<16x1xf32> to vector<16x16xf32>
    %184 = arith.subf %180, %183 : vector<16x16xf32>
    %185 = math.exp %184 : vector<16x16xf32>
    %cst_83 = arith.constant dense<0.000000e+00> : vector<16xf32>
    %186 = vector.multi_reduction <add>, %185, %cst_83 [1] : vector<16x16xf32> to vector<16xf32>
    %187 = vector.shape_cast %186 : vector<16xf32> to vector<16x1xf32>
    %188 = vector.broadcast %187 : vector<16x1xf32> to vector<16x16xf32>
    %189 = arith.divf %185, %188 : vector<16x16xf32>
    %190 = vector.broadcast %176 : vector<1x32xf32> to vector<16x32xf32>
    %191 = arith.mulf %174, %190 : vector<16x32xf32>
    %cst_84 = arith.constant dense<0.000000e+00> : vector<16x32xf32>
    %192 = tpu.matmul %189, %191, %cst_84 {dimension_numbers = #tpu.dot_dimension_numbers<[1], [0], [0], [1], [0, 0, 1, 1], [], []>} : vector<16x16xf32>, vector<16x32xf32>, vector<16x32xf32> -> vector<16x32xf32>
    %193 = arith.addf %175, %192 : vector<16x32xf32>
    %194 = vector.extract_strided_slice %4 {offsets = [1, 0], sizes = [1, 32], strides = [1, 1]} : vector<4x32xf32> to vector<1x32xf32>
    %195 = vector.broadcast %194 : vector<1x32xf32> to vector<16x32xf32>
    %196 = arith.mulf %172, %195 : vector<16x32xf32>
    "tpu.trace_start"() <{level = 10 : i32, message = "qd,kd->qk"}> : () -> ()
    %cst_85 = arith.constant dense<0.000000e+00> : vector<16x16xf32>
    %197 = tpu.matmul %196, %173, %cst_85 {dimension_numbers = #tpu.dot_dimension_numbers<[1], [1], [0], [0], [0, 0, 1, 0], [], []>} : vector<16x32xf32>, vector<16x32xf32>, vector<16x16xf32> -> vector<16x16xf32>
    "tpu.trace_stop"() : () -> ()
    %198 = arith.addf %197, %3 : vector<16x16xf32>
    %cst_86 = arith.constant dense<0xFF800000> : vector<16xf32>
    %199 = vector.multi_reduction <maximumf>, %198, %cst_86 [1] : vector<16x16xf32> to vector<16xf32>
    %200 = vector.shape_cast %199 : vector<16xf32> to vector<16x1xf32>
    %201 = vector.broadcast %200 : vector<16x1xf32> to vector<16x16xf32>
    %202 = arith.subf %198, %201 : vector<16x16xf32>
    %203 = math.exp %202 : vector<16x16xf32>
    %cst_87 = arith.constant dense<0.000000e+00> : vector<16xf32>
    %204 = vector.multi_reduction <add>, %203, %cst_87 [1] : vector<16x16xf32> to vector<16xf32>
    %205 = vector.shape_cast %204 : vector<16xf32> to vector<16x1xf32>
    %206 = vector.broadcast %205 : vector<16x1xf32> to vector<16x16xf32>
    %207 = arith.divf %203, %206 : vector<16x16xf32>
    %208 = vector.broadcast %194 : vector<1x32xf32> to vector<16x32xf32>
    %209 = arith.mulf %174, %208 : vector<16x32xf32>
    %cst_88 = arith.constant dense<0.000000e+00> : vector<16x32xf32>
    %210 = tpu.matmul %207, %209, %cst_88 {dimension_numbers = #tpu.dot_dimension_numbers<[1], [0], [0], [1], [0, 0, 1, 1], [], []>} : vector<16x16xf32>, vector<16x32xf32>, vector<16x32xf32> -> vector<16x32xf32>
    %211 = arith.addf %193, %210 : vector<16x32xf32>
    %212 = vector.extract_strided_slice %4 {offsets = [2, 0], sizes = [1, 32], strides = [1, 1]} : vector<4x32xf32> to vector<1x32xf32>
    %213 = vector.broadcast %212 : vector<1x32xf32> to vector<16x32xf32>
    %214 = arith.mulf %172, %213 : vector<16x32xf32>
    "tpu.trace_start"() <{level = 10 : i32, message = "qd,kd->qk"}> : () -> ()
    %cst_89 = arith.constant dense<0.000000e+00> : vector<16x16xf32>
    %215 = tpu.matmul %214, %173, %cst_89 {dimension_numbers = #tpu.dot_dimension_numbers<[1], [1], [0], [0], [0, 0, 1, 0], [], []>} : vector<16x32xf32>, vector<16x32xf32>, vector<16x16xf32> -> vector<16x16xf32>
    "tpu.trace_stop"() : () -> ()
    %216 = arith.addf %215, %3 : vector<16x16xf32>
    %cst_90 = arith.constant dense<0xFF800000> : vector<16xf32>
    %217 = vector.multi_reduction <maximumf>, %216, %cst_90 [1] : vector<16x16xf32> to vector<16xf32>
    %218 = vector.shape_cast %217 : vector<16xf32> to vector<16x1xf32>
    %219 = vector.broadcast %218 : vector<16x1xf32> to vector<16x16xf32>
    %220 = arith.subf %216, %219 : vector<16x16xf32>
    %221 = math.exp %220 : vector<16x16xf32>
    %cst_91 = arith.constant dense<0.000000e+00> : vector<16xf32>
    %222 = vector.multi_reduction <add>, %221, %cst_91 [1] : vector<16x16xf32> to vector<16xf32>
    %223 = vector.shape_cast %222 : vector<16xf32> to vector<16x1xf32>
    %224 = vector.broadcast %223 : vector<16x1xf32> to vector<16x16xf32>
    %225 = arith.divf %221, %224 : vector<16x16xf32>
    %226 = vector.broadcast %212 : vector<1x32xf32> to vector<16x32xf32>
    %227 = arith.mulf %174, %226 : vector<16x32xf32>
    %cst_92 = arith.constant dense<0.000000e+00> : vector<16x32xf32>
    %228 = tpu.matmul %225, %227, %cst_92 {dimension_numbers = #tpu.dot_dimension_numbers<[1], [0], [0], [1], [0, 0, 1, 1], [], []>} : vector<16x16xf32>, vector<16x32xf32>, vector<16x32xf32> -> vector<16x32xf32>
    %229 = arith.addf %211, %228 : vector<16x32xf32>
    %230 = vector.extract_strided_slice %4 {offsets = [3, 0], sizes = [1, 32], strides = [1, 1]} : vector<4x32xf32> to vector<1x32xf32>
    %231 = vector.broadcast %230 : vector<1x32xf32> to vector<16x32xf32>
    %232 = arith.mulf %172, %231 : vector<16x32xf32>
    "tpu.trace_start"() <{level = 10 : i32, message = "qd,kd->qk"}> : () -> ()
    %cst_93 = arith.constant dense<0.000000e+00> : vector<16x16xf32>
    %233 = tpu.matmul %232, %173, %cst_93 {dimension_numbers = #tpu.dot_dimension_numbers<[1], [1], [0], [0], [0, 0, 1, 0], [], []>} : vector<16x32xf32>, vector<16x32xf32>, vector<16x16xf32> -> vector<16x16xf32>
    "tpu.trace_stop"() : () -> ()
    %234 = arith.addf %233, %3 : vector<16x16xf32>
    %cst_94 = arith.constant dense<0xFF800000> : vector<16xf32>
    %235 = vector.multi_reduction <maximumf>, %234, %cst_94 [1] : vector<16x16xf32> to vector<16xf32>
    %236 = vector.shape_cast %235 : vector<16xf32> to vector<16x1xf32>
    %237 = vector.broadcast %236 : vector<16x1xf32> to vector<16x16xf32>
    %238 = arith.subf %234, %237 : vector<16x16xf32>
    %239 = math.exp %238 : vector<16x16xf32>
    %cst_95 = arith.constant dense<0.000000e+00> : vector<16xf32>
    %240 = vector.multi_reduction <add>, %239, %cst_95 [1] : vector<16x16xf32> to vector<16xf32>
    %241 = vector.shape_cast %240 : vector<16xf32> to vector<16x1xf32>
    %242 = vector.broadcast %241 : vector<16x1xf32> to vector<16x16xf32>
    %243 = arith.divf %239, %242 : vector<16x16xf32>
    %244 = vector.broadcast %230 : vector<1x32xf32> to vector<16x32xf32>
    %245 = arith.mulf %174, %244 : vector<16x32xf32>
    %cst_96 = arith.constant dense<0.000000e+00> : vector<16x32xf32>
    %246 = tpu.matmul %243, %245, %cst_96 {dimension_numbers = #tpu.dot_dimension_numbers<[1], [0], [0], [1], [0, 0, 1, 1], [], []>} : vector<16x16xf32>, vector<16x32xf32>, vector<16x32xf32> -> vector<16x32xf32>
    %247 = arith.addf %229, %246 : vector<16x32xf32>
    %c1_97 = arith.constant 1 : index
    %c0_98 = arith.constant 0 : index
    %c0_99 = arith.constant 0 : index
    %248 = vector.load %arg6[%c1_97, %c0_98, %c0_99] : memref<2x32x32xf32, #tpu.memory_space<vmem>>, vector<1x32x32xf32>
    %249 = vector.shape_cast %248 : vector<1x32x32xf32> to vector<32x32xf32>
    %cst_100 = arith.constant dense<0.000000e+00> : vector<16x32xf32>
    %250 = tpu.matmul %247, %249, %cst_100 {dimension_numbers = #tpu.dot_dimension_numbers<[1], [0], [0], [1], [0, 0, 1, 1], [], []>} : vector<16x32xf32>, vector<32x32xf32>, vector<16x32xf32> -> vector<16x32xf32>
    %c1_101 = arith.constant 1 : index
    %c0_102 = arith.constant 0 : index
    %c0_103 = arith.constant 0 : index
    %251 = vector.load %arg7[%c1_101, %c0_102, %c0_103] : memref<2x1x32xf32, #tpu.memory_space<vmem>>, vector<1x1x32xf32>
    %252 = vector.shape_cast %251 : vector<1x1x32xf32> to vector<1x32xf32>
    %253 = vector.broadcast %252 : vector<1x32xf32> to vector<16x32xf32>
    %254 = arith.addf %250, %253 : vector<16x32xf32>
    %255 = arith.addf %164, %254 : vector<16x32xf32>
    %c1_104 = arith.constant 1 : index
    %c0_105 = arith.constant 0 : index
    %c0_106 = arith.constant 0 : index
    %256 = vector.load %arg12[%c1_104, %c0_105, %c0_106] : memref<2x1x32xf32, #tpu.memory_space<vmem>>, vector<1x1x32xf32>
    %257 = vector.shape_cast %256 : vector<1x1x32xf32> to vector<1x32xf32>
    %c1_107 = arith.constant 1 : index
    %c0_108 = arith.constant 0 : index
    %c0_109 = arith.constant 0 : index
    %258 = vector.load %arg13[%c1_107, %c0_108, %c0_109] : memref<2x1x32xf32, #tpu.memory_space<vmem>>, vector<1x1x32xf32>
    %259 = vector.shape_cast %258 : vector<1x1x32xf32> to vector<1x32xf32>
    %cst_110 = arith.constant dense<0.000000e+00> : vector<16xf32>
    %260 = vector.multi_reduction <add>, %255, %cst_110 [1] : vector<16x32xf32> to vector<16xf32>
    %261 = vector.shape_cast %260 : vector<16xf32> to vector<16x1xf32>
    %cst_111 = arith.constant 3.200000e+01 : f32
    %262 = vector.broadcast %cst_111 : f32 to vector<16x1xf32>
    %263 = arith.divf %261, %262 : vector<16x1xf32>
    %264 = vector.broadcast %263 : vector<16x1xf32> to vector<16x32xf32>
    %265 = arith.subf %255, %264 : vector<16x32xf32>
    %266 = arith.mulf %265, %265 : vector<16x32xf32>
    %cst_112 = arith.constant dense<0.000000e+00> : vector<16xf32>
    %267 = vector.multi_reduction <add>, %266, %cst_112 [1] : vector<16x32xf32> to vector<16xf32>
    %268 = vector.shape_cast %267 : vector<16xf32> to vector<16x1xf32>
    %cst_113 = arith.constant 3.200000e+01 : f32
    %269 = vector.broadcast %cst_113 : f32 to vector<16x1xf32>
    %270 = arith.divf %268, %269 : vector<16x1xf32>
    %271 = vector.broadcast %263 : vector<16x1xf32> to vector<16x32xf32>
    %272 = arith.subf %255, %271 : vector<16x32xf32>
    %cst_114 = arith.constant 9.99999974E-6 : f32
    %273 = vector.broadcast %cst_114 : f32 to vector<16x1xf32>
    %274 = arith.addf %270, %273 : vector<16x1xf32>
    %275 = math.rsqrt %274 : vector<16x1xf32>
    %276 = vector.broadcast %275 : vector<16x1xf32> to vector<16x32xf32>
    %277 = arith.mulf %272, %276 : vector<16x32xf32>
    %278 = vector.broadcast %257 : vector<1x32xf32> to vector<16x32xf32>
    %279 = arith.mulf %277, %278 : vector<16x32xf32>
    %280 = vector.broadcast %259 : vector<1x32xf32> to vector<16x32xf32>
    %281 = arith.addf %279, %280 : vector<16x32xf32>
    %c1_115 = arith.constant 1 : index
    %c0_116 = arith.constant 0 : index
    %c0_117 = arith.constant 0 : index
    %282 = vector.load %arg8[%c1_115, %c0_116, %c0_117] : memref<2x32x32xf32, #tpu.memory_space<vmem>>, vector<1x32x32xf32>
    %283 = vector.shape_cast %282 : vector<1x32x32xf32> to vector<32x32xf32>
    %cst_118 = arith.constant dense<0.000000e+00> : vector<16x32xf32>
    %284 = tpu.matmul %281, %283, %cst_118 {dimension_numbers = #tpu.dot_dimension_numbers<[1], [0], [0], [1], [0, 0, 1, 1], [], []>} : vector<16x32xf32>, vector<32x32xf32>, vector<16x32xf32> -> vector<16x32xf32>
    %c1_119 = arith.constant 1 : index
    %c0_120 = arith.constant 0 : index
    %c0_121 = arith.constant 0 : index
    %285 = vector.load %arg9[%c1_119, %c0_120, %c0_121] : memref<2x1x32xf32, #tpu.memory_space<vmem>>, vector<1x1x32xf32>
    %286 = vector.shape_cast %285 : vector<1x1x32xf32> to vector<1x32xf32>
    %287 = vector.broadcast %286 : vector<1x32xf32> to vector<16x32xf32>
    %288 = arith.addf %284, %287 : vector<16x32xf32>
    %cst_122 = arith.constant 0.000000e+00 : f32
    %289 = vector.broadcast %cst_122 : f32 to vector<16x32xf32>
    %290 = arith.maximumf %288, %289 : vector<16x32xf32>
    %c1_123 = arith.constant 1 : index
    %c0_124 = arith.constant 0 : index
    %c0_125 = arith.constant 0 : index
    %291 = vector.load %arg10[%c1_123, %c0_124, %c0_125] : memref<2x32x32xf32, #tpu.memory_space<vmem>>, vector<1x32x32xf32>
    %292 = vector.shape_cast %291 : vector<1x32x32xf32> to vector<32x32xf32>
    %cst_126 = arith.constant dense<0.000000e+00> : vector<16x32xf32>
    %293 = tpu.matmul %290, %292, %cst_126 {dimension_numbers = #tpu.dot_dimension_numbers<[1], [0], [0], [1], [0, 0, 1, 1], [], []>} : vector<16x32xf32>, vector<32x32xf32>, vector<16x32xf32> -> vector<16x32xf32>
    %c1_127 = arith.constant 1 : index
    %c0_128 = arith.constant 0 : index
    %c0_129 = arith.constant 0 : index
    %294 = vector.load %arg11[%c1_127, %c0_128, %c0_129] : memref<2x1x32xf32, #tpu.memory_space<vmem>>, vector<1x1x32xf32>
    %295 = vector.shape_cast %294 : vector<1x1x32xf32> to vector<1x32xf32>
    %296 = vector.broadcast %295 : vector<1x32xf32> to vector<16x32xf32>
    %297 = arith.addf %293, %296 : vector<16x32xf32>
    %298 = arith.addf %281, %297 : vector<16x32xf32>
    %c1_130 = arith.constant 1 : index
    %c0_131 = arith.constant 0 : index
    %c0_132 = arith.constant 0 : index
    %299 = vector.load %arg14[%c1_130, %c0_131, %c0_132] : memref<2x1x32xf32, #tpu.memory_space<vmem>>, vector<1x1x32xf32>
    %300 = vector.shape_cast %299 : vector<1x1x32xf32> to vector<1x32xf32>
    %c1_133 = arith.constant 1 : index
    %c0_134 = arith.constant 0 : index
    %c0_135 = arith.constant 0 : index
    %301 = vector.load %arg15[%c1_133, %c0_134, %c0_135] : memref<2x1x32xf32, #tpu.memory_space<vmem>>, vector<1x1x32xf32>
    %302 = vector.shape_cast %301 : vector<1x1x32xf32> to vector<1x32xf32>
    %cst_136 = arith.constant dense<0.000000e+00> : vector<16xf32>
    %303 = vector.multi_reduction <add>, %298, %cst_136 [1] : vector<16x32xf32> to vector<16xf32>
    %304 = vector.shape_cast %303 : vector<16xf32> to vector<16x1xf32>
    %cst_137 = arith.constant 3.200000e+01 : f32
    %305 = vector.broadcast %cst_137 : f32 to vector<16x1xf32>
    %306 = arith.divf %304, %305 : vector<16x1xf32>
    %307 = vector.broadcast %306 : vector<16x1xf32> to vector<16x32xf32>
    %308 = arith.subf %298, %307 : vector<16x32xf32>
    %309 = arith.mulf %308, %308 : vector<16x32xf32>
    %cst_138 = arith.constant dense<0.000000e+00> : vector<16xf32>
    %310 = vector.multi_reduction <add>, %309, %cst_138 [1] : vector<16x32xf32> to vector<16xf32>
    %311 = vector.shape_cast %310 : vector<16xf32> to vector<16x1xf32>
    %cst_139 = arith.constant 3.200000e+01 : f32
    %312 = vector.broadcast %cst_139 : f32 to vector<16x1xf32>
    %313 = arith.divf %311, %312 : vector<16x1xf32>
    %314 = vector.broadcast %306 : vector<16x1xf32> to vector<16x32xf32>
    %315 = arith.subf %298, %314 : vector<16x32xf32>
    %cst_140 = arith.constant 9.99999974E-6 : f32
    %316 = vector.broadcast %cst_140 : f32 to vector<16x1xf32>
    %317 = arith.addf %313, %316 : vector<16x1xf32>
    %318 = math.rsqrt %317 : vector<16x1xf32>
    %319 = vector.broadcast %318 : vector<16x1xf32> to vector<16x32xf32>
    %320 = arith.mulf %315, %319 : vector<16x32xf32>
    %321 = vector.broadcast %300 : vector<1x32xf32> to vector<16x32xf32>
    %322 = arith.mulf %320, %321 : vector<16x32xf32>
    %323 = vector.broadcast %302 : vector<1x32xf32> to vector<16x32xf32>
    %324 = arith.addf %322, %323 : vector<16x32xf32>
    %325 = vector.extract_strided_slice %324 {offsets = [0, 0], sizes = [2, 32], strides = [1, 1]} : vector<16x32xf32> to vector<2x32xf32>
    %c0_141 = arith.constant 0 : index
    %c0_142 = arith.constant 0 : index
    %326 = vector.load %arg16[%c0_141, %c0_142] : memref<32x32xf32, #tpu.memory_space<vmem>>, vector<32x32xf32>
    %cst_143 = arith.constant dense<0.000000e+00> : vector<2x32xf32>
    %327 = tpu.matmul %325, %326, %cst_143 {dimension_numbers = #tpu.dot_dimension_numbers<[1], [0], [0], [1], [0, 0, 1, 1], [], []>} : vector<2x32xf32>, vector<32x32xf32>, vector<2x32xf32> -> vector<2x32xf32>
    %c0_144 = arith.constant 0 : index
    %c0_145 = arith.constant 0 : index
    %328 = vector.load %arg17[%c0_144, %c0_145] : memref<1x32xf32, #tpu.memory_space<vmem>>, vector<1x32xf32>
    %329 = vector.broadcast %328 : vector<1x32xf32> to vector<2x32xf32>
    %330 = arith.addf %327, %329 : vector<2x32xf32>
    %cst_146 = arith.constant 0.000000e+00 : f32
    %331 = vector.broadcast %cst_146 : f32 to vector<2x32xf32>
    %332 = arith.maximumf %330, %331 : vector<2x32xf32>
    %c0_147 = arith.constant 0 : index
    %c0_148 = arith.constant 0 : index
    %333 = vector.load %arg18[%c0_147, %c0_148] : memref<32x128xf32, #tpu.memory_space<vmem>>, vector<32x128xf32>
    %cst_149 = arith.constant dense<0.000000e+00> : vector<2x128xf32>
    %334 = tpu.matmul %332, %333, %cst_149 {dimension_numbers = #tpu.dot_dimension_numbers<[1], [0], [0], [1], [0, 0, 1, 1], [], []>} : vector<2x32xf32>, vector<32x128xf32>, vector<2x128xf32> -> vector<2x128xf32>
    %c0_150 = arith.constant 0 : index
    %c0_151 = arith.constant 0 : index
    %335 = vector.load %arg19[%c0_150, %c0_151] : memref<1x128xf32, #tpu.memory_space<vmem>>, vector<1x128xf32>
    %336 = vector.broadcast %335 : vector<1x128xf32> to vector<2x128xf32>
    %337 = arith.addf %334, %336 : vector<2x128xf32>
    %c0_152 = arith.constant 0 : index
    %c0_153 = arith.constant 0 : index
    %338 = vector.load %arg20[%c0_152, %c0_153] : memref<2x128xf32, #tpu.memory_space<vmem>>, vector<2x128xf32>
    tpu.vector_store %arg20[%c0_152, %c0_153], %337 {strides = array<i32>} : memref<2x128xf32, #tpu.memory_space<vmem>>, vector<2x128xf32>,
    return
  }
}

</mosaic_0001>

<bundles_post_ra>
// kernel: transformer_forward.1
= control target key start
LH: loop header
LB: loop body
LE: loop exit
PB: predicated region body
PF: predicated region fallthrough
CT: control target
= control target key end

     0   :  { %s4014_s0 = inlined_call_operand.vmem [shape: f32[16,32], index: 0, kind: input, shape index: {}]   ;;  %s4015_s1 = inlined_call_operand.vmem [shape: f32[16,32], index: 1, kind: input, shape index: {}]   ;;  %s4016_s2 = inlined_call_operand.vmem [shape: f32[16,16], index: 2, kind: input, shape index: {}]   ;;  %s4017_s3 = inlined_call_operand.vmem [shape: f32[4,32], index: 3, kind: input, shape index: {}]   ;;  %s4018_s4 = inlined_call_operand.vmem [shape: f32[2,32,96], index: 4, kind: input, shape index: {}]   ;;  %s4019_s5 = inlined_call_operand.vmem [shape: f32[2,1,96], index: 5, kind: input, shape index: {}]   ;;  %s4020_s6 = inlined_call_operand.vmem [shape: f32[2,32,32], index: 6, kind: input, shape index: {}]   ;;  %s4021_s7 = inlined_call_operand.vmem [shape: f32[2,1,32], index: 7, kind: input, shape index: {}]   ;;  %s4022_s8 = inlined_call_operand.vmem [shape: f32[2,32,32], index: 8, kind: input, shape index: {}]   ;;  %s4023_s9 = inlined_call_operand.vmem [shape: f32[2,1,32], index: 9, kind: input, shape index: {}]   ;;  %s4024_s10 = inlined_call_operand.vmem [shape: f32[2,32,32], index: 10, kind: input, shape index: {}]   ;;  %s4025_s11 = inlined_call_operand.vmem [shape: f32[2,1,32], index: 11, kind: input, shape index: {}]   ;;  %s4026_s12 = inlined_call_operand.vmem [shape: f32[2,1,32], index: 12, kind: input, shape index: {}]   ;;  %s4027_s13 = inlined_call_operand.vmem [shape: f32[2,1,32], index: 13, kind: input, shape index: {}]   ;;  %s4028_s14 = inlined_call_operand.vmem [shape: f32[2,1,32], index: 14, kind: input, shape index: {}]   ;;  %s4029_s15 = inlined_call_operand.vmem [shape: f32[2,1,32], index: 15, kind: input, shape index: {}]   ;;  %s4030_s16 = inlined_call_operand.vmem [shape: f32[32,32], index: 16, kind: input, shape index: {}]   ;;  %s4031_s17 = inlined_call_operand.vmem [shape: f32[1,32], index: 17, kind: input, shape index: {}]   ;;  %s4032_s18 = inlined_call_operand.vmem [shape: f32[32,128], index: 18, kind: input, shape index: {}]   ;;  %s4033_s19 = inlined_call_operand.vmem [shape: f32[1,128], index: 19, kind: input, shape index: {}]   ;;  %s4034_s20 = inlined_call_operand.hbm [shape: f32[2,128], index: 20, kind: output, shape index: {}]  }
   0x1   :  { %4039 = sst [smem:[#allocation5_spill]] %s4014_s0 }
   0x2   :  { %4040 = sst [smem:[#allocation6_spill]] %s4015_s1 }
   0x3   :  { %4041 = sst [smem:[#allocation7_spill]] %s4016_s2 }
   0x4   :  { %4042 = sst [smem:[#allocation8_spill]] %s4017_s3 }
   0x5   :  { %4043 = sst [smem:[#allocation9_spill]] %s4018_s4 }
   0x6   :  { %s4044_s23 = sld [smem:[#allocation9_spill]]  ;;  %vm86_vm0 = vcmask 261120  }
   0x7   :  { %s4045_s28 = sld [smem:[#allocation5_spill]] }
   0x8   :  { %s4046_s30 = sld [smem:[#allocation6_spill]] }
   0xc   :  { %v78_v0 = vld [vmem:[%s4044_s23 + $0x18] sm:$0xff]  ;;  %v77_v1 = vld [vmem:[%s4044_s23 + $0x10] sm:$0xff]  ;;  %v76_v2 = vld [vmem:[%s4044_s23 + $0x8] sm:$0xff] }
   0xd   :  { %3039 = vmatprep.subr.mxu0 %v78_v0  ;;  %v66_v3 = vld [vmem:[%s4045_s28] sm:$0xff]  ;;  %v67_v6 = vld [vmem:[%s4045_s28 + $0x8] sm:$0xff] }
   0xe   :  { %v68_v4 = vld [vmem:[%s4046_s30] sm:$0xff]  ;;  %3040 = vmatpush3.msra.mxu0 %v78_v0  ;;  %v69_v7 = vld [vmem:[%s4046_s30 + $0x8] sm:$0xff] }
   0xf   :  { %v3493_v5 = vadd.f32 %v68_v4, %v66_v3 }
  0x10   :  { %25 = vsyncpa [#allocation3], 0  ;;  %3041 = vmatprep.subr.mxu0 %v77_v1  ;;  %v75_v8 = vld [vmem:[%s4044_s23] sm:$0xff]  ;;  %v3506_v9 = vadd.f32 %v69_v7, %v67_v6  ;;  %v168_v10 = vlaneseq  ;;  %s4047_s26 = sld [smem:[#allocation8_spill]]  ;;  %s3368_s4 = smov 96   ;;  %vm265_vm1 = vcmask 130048  }
  0x11   :  { %3042 = vmatpush3.msra.mxu0 %v77_v1  ;;  %3047 = vmatprep.mubr.msk.f32.mxu0 %vm86_vm0, %v3493_v5  ;;  %v2809_v17 = vld [vmem:[%s4019_s5] ss:$0 sm:$0xff]  ;;  %s4048_s0 = sld [smem:[#allocation7_spill]]  ;;  %s3369_s22 = smov 64   ;;  %vm3371_vm2 = vmmov 0  }
  0x12   :  { %3043 = vmatprep.subr.mxu0 %v76_v2  ;;  %v169_v11 = vshrl.u32 %v168_v10, 7 }
  0x13   :  { %3044 = vmatpush3.msra.mxu0 %v76_v2 }
  0x14   :  { %3045 = vmatprep.subr.mxu0 %v75_v8  ;;  %v589_v13 = vsub.s32 2, %v169_v11  ;;  %v795_v14 = vsub.s32 3, %v169_v11  ;;  %v170_v18 = vsub.s32 0, %v169_v11  ;;  %v296_v19 = vsub.s32 1, %v169_v11 }
  0x15   :  { %3046 = vmatpush3.msra.mxu0 %v75_v8 }
  0x16   :  { %3048 = vmatmul.mubr.msk.f32.vlgmr.msra.gmra.mxu0 %vm86_vm0, %v3506_v9  ;;  %v74_v12 = vld [vmem:[%s4047_s26] sm:$0xf] }
  0x17   :  { %v3513_v15 = vrot.slane %v74_v12, %v589_v13  ;;  %v3515_v16 = vrot.slane %v74_v12, %v795_v14  ;;  %v3526_v24 = vrot.slane %v74_v12, %v170_v18  ;;  %v3528_v25 = vrot.slane %v74_v12, %v296_v19  ;;  %v3581_v34 = vld [vmem:[%s4048_s0 + $0x8] sm:$0xff]  ;;  %v3586_v37 = vld [vmem:[%s4048_s0] sm:$0xff] }
  0xd6   :  { %v3049_v20 = vpop.f32.mrf.mxu0 }
  0xd7   :  { %v3520_v21 = vadd.f32 %v3049_v20, %v2809_v17 }
  0xd8   :  { %v159_v22 = vpop.f32.mrf.mxu0 }
  0xd9   :  { %v3522_v23 = vadd.f32 %v2809_v17, %v159_v22  ;;  %178 = vrot.lane.b32.xlu0 %v3520_v21, %s3368_s4  ;;  %v173_v30 = vmul.f32 %v3526_v24, %v3520_v21  ;;  %v299_v31 = vmul.f32 %v3528_v25, %v3520_v21  ;;  %v592_v33 = vmul.f32 %v3513_v15, %v3520_v21 }
  0xdb   :  { %v172_v26 = vmul.f32 %v3526_v24, %v3522_v23  ;;  %v298_v27 = vmul.f32 %v3528_v25, %v3522_v23  ;;  %v591_v32 = vmul.f32 %v3513_v15, %v3522_v23 }
  0xdd   :  { %176 = vrot.lane.b32.xlu0 %v3522_v23, %s3368_s4  ;;  %3054 = vmatprep.mubr.msk.f32.mxu1 %vm86_vm0, %v172_v26 }
  0xde   :  { %3061 = vmatprep.mubr.msk.f32.mxu0 %vm86_vm0, %v298_v27 }
 0x14b   :  { %v3538_v28 = vpop.permute.xlu0 %178 }
 0x14c   :  { %3050 = vmatprep.subr.msk.mxu1 %vm86_vm0, %v3538_v28  ;;  %3057 = vmatprep.subr.msk.mxu0 %vm86_vm0, %v3538_v28 }
 0x14d   :  { %3051 = vmatpush3.xpose.msk.msra.mxu1 %vm86_vm0, %v3538_v28  ;;  %3058 = vmatpush3.xpose.msk.msra.mxu0 %vm86_vm0, %v3538_v28 }
 0x14f   :  { %v3548_v29 = vpop.permute.xlu0 %176 }
 0x150   :  { %3052 = vmatprep.subr.msk.mxu1 %vm86_vm0, %v3548_v29  ;;  %3059 = vmatprep.subr.msk.mxu0 %vm86_vm0, %v3548_v29 }
 0x151   :  { %3053 = vmatpush3.xpose.msk.msra.mxu1 %vm86_vm0, %v3548_v29  ;;  %3060 = vmatpush3.xpose.msk.msra.mxu0 %vm86_vm0, %v3548_v29 }
 0x152   :  { %3078 = vmatprep.subr.msk.mxu0 %vm86_vm0, %v3538_v28 }
 0x154   :  { %3055 = vmatmul.mubr.msk.f32.vlgmr.msra.gmra.mxu1 %vm86_vm0, %v173_v30  ;;  %3062 = vmatmul.mubr.msk.f32.vlgmr.msra.gmra.mxu0 %vm86_vm0, %v299_v31 }
 0x155   :  { %3079 = vmatpush3.xpose.msk.msra.mxu0 %vm86_vm0, %v3538_v28  ;;  %3082 = vmatprep.mubr.msk.f32.mxu0 %vm86_vm0, %v591_v32 }
 0x156   :  { %3080 = vmatprep.subr.msk.mxu0 %vm86_vm0, %v3548_v29 }
 0x159   :  { %3081 = vmatpush3.xpose.msk.msra.mxu0 %vm86_vm0, %v3548_v29 }
 0x15c   :  { %3083 = vmatmul.mubr.msk.f32.vlgmr.msra.gmra.mxu0 %vm86_vm0, %v592_v33 }
 0x214   :  { %v3056_v35 = vpop.f32.mrf.mxu1  ;;  %v3063_v36 = vpop.f32.mrf.mxu0 }
 0x215   :  { %v378_v38 = vadd.f32 %v3063_v36, %v3581_v34  ;;  %v262_v45 = vadd.f32 %v3056_v35, %v3581_v34 }
 0x216   :  { %v256_v39 = vpop.f32.mrf.mxu1  ;;  %v372_v40 = vpop.f32.mrf.mxu0 }
 0x217   :  { %v257_v41 = vadd.f32 %v256_v39, %v3586_v37  ;;  %v373_v42 = vadd.f32 %v372_v40, %v3586_v37  ;;  %v384_v43 = vsel %vm265_vm1, %v378_v38, -inf  ;;  %v269_v47 = vsel %vm265_vm1, %v262_v45, -inf }
 0x218   :  { %385 = vmax.xlane.f32.xlu1 %v384_v43 }
 0x219   :  { %v266_v44 = vsel %vm265_vm1, %v257_v41, -inf  ;;  %v381_v46 = vsel %vm265_vm1, %v373_v42, -inf }
 0x21a   :  { %267 = vmax.xlane.f32.xlu0 %v266_v44 }
 0x21c   :  { %382 = vmax.xlane.f32.xlu1 %v381_v46  ;;  %v3084_v48 = vpop.f32.mrf.mxu0 }
 0x21d   :  { %v671_v49 = vadd.f32 %v3084_v48, %v3581_v34 }
 0x21e   :  { %v665_v50 = vpop.f32.mrf.mxu0 }
 0x21f   :  { %v666_v51 = vadd.f32 %v665_v50, %v3586_v37  ;;  %v677_v52 = vsel %vm265_vm1, %v671_v49, -inf }
 0x220   :  { %270 = vmax.xlane.f32.xlu1 %v269_v47 }
 0x221   :  { %v674_v53 = vsel %vm265_vm1, %v666_v51, -inf }
 0x230   :  { %697 = vrot.lane.b32.xlu0 %v3513_v15, %s3369_s22 }
 0x231   :  { %404 = vrot.lane.b32.xlu1 %v3528_v25, %s3369_s22 }
 0x255   :  { %678 = vmax.xlane.f32.xlu1 %v677_v52 }
 0x259   :  { %675 = vmax.xlane.f32.xlu1 %v674_v53 }
 0x26a   :  { %289 = vrot.lane.b32.xlu1 %v3526_v24, %s3369_s22 }
 0x2a1   :  { %v386_v54 = vpop.xlane.xlu1 %385 }
 0x2a2   :  { %v388_v60 = vsub.f32 %v378_v38, %v386_v54 }
 0x2a3   :  { %v268_v1 = vpop.xlane.xlu0 %267 }
 0x2a4   :  { %v391_v61 = vmul.f32 1.442695, %v388_v60  ;;  %v272_v13 = vsub.f32 %v257_v41, %v268_v1 }
 0x2a5   :  { %v383_v55 = vpop.xlane.xlu1 %382 }
 0x2a6   :  { %3266 = vpow2.f32 %v391_v61  ;;  %v387_v11 = vsub.f32 %v373_v42, %v383_v55  ;;  %v274_v17 = vmul.f32 1.442695, %v272_v13 }
 0x2a7   :  { %v3624_v7 = vpop.permute.xlu0 %697 }
 0x2a8   :  { %v700_v8 = vmul.f32 %v3624_v7, %v3522_v23  ;;  %v389_v14 = vmul.f32 1.442695, %v387_v11  ;;  %v701_v42 = vmul.f32 %v3624_v7, %v3520_v21 }
 0x2a9   :  { %v271_v56 = vpop.xlane.xlu1 %270 }
 0x2aa   :  { %v273_v10 = vsub.f32 %v262_v45, %v271_v56 }
 0x2ac   :  { %v276_v12 = vmul.f32 1.442695, %v273_v10 }
 0x2ad   :  { %v3606_v57 = vpop.permute.xlu1 %404 }
 0x2ae   :  { %v407_v58 = vmul.f32 %v3606_v57, %v3522_v23  ;;  %v408_v59 = vmul.f32 %v3606_v57, %v3520_v21  ;;  %3268 = vpow2.f32 %v276_v12 }
 0x2af   :  { %3270 = vpow2.f32 %v389_v14 }
 0x2b0   :  { %411 = vrot.lane.b32.xlu1 %v407_v58, %s3369_s22  ;;  %413 = vrot.lane.b32.xlu0 %v408_v59, %s3369_s22  ;;  %3272 = vpow2.f32 %v274_v17 }
 0x2b3   :  { %v3614_v62 = vpop.eup %3266 }
 0x2b4   :  { %v396_v63 = vsel %vm265_vm1, %v3614_v62, 0.0 }
 0x2bb   :  { %v3269_v26 = vpop.eup %3268 }
 0x2bc   :  { %v281_v27 = vsel %vm265_vm1, %v3269_v26, 0.0  ;;  %v3271_v30 = vpop.eup %3270 }
 0x2bd   :  { %v393_v31 = vsel %vm265_vm1, %v3271_v30, 0.0  ;;  %v3273_v32 = vpop.eup %3272 }
 0x2be   :  { %v278_v33 = vsel %vm265_vm1, %v3273_v32, 0.0 }
 0x2cf   :  { %397 = vadd.xlane.f32.xlu0 %v396_v63 }
 0x2de   :  { %v679_v0 = vpop.xlane.xlu1 %678 }
 0x2df   :  { %v681_v18 = vsub.f32 %v671_v49, %v679_v0 }
 0x2e1   :  { %v684_v19 = vmul.f32 1.442695, %v681_v18 }
 0x2e2   :  { %v676_v2 = vpop.xlane.xlu1 %675 }
 0x2e3   :  { %v680_v20 = vsub.f32 %v666_v51, %v676_v2  ;;  %3274 = vpow2.f32 %v684_v19  ;;  %v797_v2 = vmul.f32 %v3515_v16, %v3522_v23 }
 0x2e5   :  { %v682_v22 = vmul.f32 1.442695, %v680_v20 }
 0x2e6   :  { %v3618_v3 = vpop.permute.xlu1 %289 }
 0x2e7   :  { %v293_v4 = vmul.f32 %v3618_v3, %v3520_v21  ;;  %v292_v6 = vmul.f32 %v3618_v3, %v3522_v23  ;;  %3276 = vpow2.f32 %v682_v22 }
 0x2e9   :  { %502 = vrot.lane.b32.xlu1 %v293_v4, %s3369_s22  ;;  %500 = vrot.lane.b32.xlu0 %v292_v6, %s3369_s22  ;;  %v798_v4 = vmul.f32 %v3515_v16, %v3520_v21 }
 0x2ed   :  { %704 = vrot.lane.b32.xlu0 %v700_v8, %s3369_s22 }
 0x2f0   :  { %v3275_v35 = vpop.eup %3274 }
 0x2f1   :  { %v689_v36 = vsel %vm265_vm1, %v3275_v35, 0.0 }
 0x2f4   :  { %v3277_v38 = vpop.eup %3276 }
 0x2f5   :  { %v686_v39 = vsel %vm265_vm1, %v3277_v38, 0.0 }
 0x30d   :  { %282 = vadd.xlane.f32.xlu1 %v281_v27 }
 0x311   :  { %394 = vadd.xlane.f32.xlu1 %v393_v31 }
 0x315   :  { %279 = vadd.xlane.f32.xlu1 %v278_v33 }
 0x319   :  { %690 = vadd.xlane.f32.xlu1 %v689_v36 }
 0x31d   :  { %687 = vadd.xlane.f32.xlu1 %v686_v39 }
 0x322   :  { %v414_v40 = vpop.permute.xlu0 %413  ;;  %v412_v41 = vpop.permute.xlu1 %411 }
 0x323   :  { %3064 = vmatprep.subr.mxu1 %v414_v40 }
 0x324   :  { %3065 = vmatpush3.msra.mxu1 %v414_v40 }
 0x325   :  { %3066 = vmatprep.subr.mxu1 %v412_v41 }
 0x326   :  { %3067 = vmatpush3.msra.mxu1 %v412_v41 }
 0x32e   :  { %706 = vrot.lane.b32.xlu1 %v701_v42, %s3369_s22 }
 0x358   :  { %v398_v45 = vpop.xlane.xlu0 %397 }
 0x359   :  { %3278 = vrcp.f32 %v398_v45 }
 0x35b   :  { %v503_v43 = vpop.permute.xlu1 %502 }
 0x35c   :  { %3071 = vmatprep.subr.mxu1 %v503_v43  ;;  %v501_v55 = vpop.permute.xlu0 %500 }
 0x360   :  { %v705_v61 = vpop.permute.xlu0 %704 }
 0x366   :  { %v3279_v50 = vpop.eup %3278 }
 0x367   :  { %v402_v53 = vmul.f32 %v3279_v50, %v3614_v62 }
 0x396   :  { %v283_v44 = vpop.xlane.xlu1 %282 }
 0x39a   :  { %v395_v46 = vpop.xlane.xlu1 %394 }
 0x39b   :  { %3280 = vrcp.f32 %v395_v46 }
 0x39c   :  { %3282 = vrcp.f32 %v283_v44 }
 0x39e   :  { %v280_v47 = vpop.xlane.xlu1 %279 }
 0x39f   :  { %3284 = vrcp.f32 %v280_v47 }
 0x3a2   :  { %v691_v48 = vpop.xlane.xlu1 %690 }
 0x3a3   :  { %3286 = vrcp.f32 %v691_v48 }
 0x3a6   :  { %v688_v49 = vpop.xlane.xlu1 %687 }
 0x3a7   :  { %3288 = vrcp.f32 %v688_v49 }
 0x3a8   :  { %v3281_v51 = vpop.eup %3280 }
 0x3a9   :  { %v400_v52 = vmul.f32 %v3281_v51, %v3271_v30  ;;  %v3283_v54 = vpop.eup %3282 }
 0x3aa   :  { %v287_v59 = vmul.f32 %v3283_v54, %v3269_v26  ;;  %v707_v60 = vpop.permute.xlu1 %706  ;;  %v999_v54 = vld [vmem:[%s4020_s6] sm:$0xff] }
 0x3ab   :  { %3068 = vmatprep.mubr.msk.f32.mxu1 %vm265_vm1, %v400_v52  ;;  %v1001_v52 = vld [vmem:[%s4020_s6 + $0x10] sm:$0xff] }
 0x3ac   :  { %v3285_v56 = vpop.eup %3284  ;;  %3069 = vmatmul.mubr.msk.f32.vlgmr.msra.gmra.mxu1 %vm265_vm1, %v402_v53  ;;  %v1000_v53 = vld [vmem:[%s4020_s6 + $0x8] sm:$0xff] }
 0x3ad   :  { %3072 = vmatpush3.msra.mxu1 %v503_v43  ;;  %v285_v58 = vmul.f32 %v3285_v56, %v3273_v32 }
 0x3ae   :  { %3073 = vmatprep.subr.mxu1 %v501_v55 }
 0x3af   :  { %3074 = vmatpush3.msra.mxu1 %v501_v55  ;;  %3075 = vmatprep.mubr.msk.f32.mxu1 %vm265_vm1, %v285_v58 }
 0x3b0   :  { %3085 = vmatprep.subr.mxu1 %v707_v60  ;;  %3076 = vmatmul.mubr.msk.f32.vlgmr.msra.gmra.mxu1 %vm265_vm1, %v287_v59  ;;  %v3287_v62 = vpop.eup %3286 }
 0x3b1   :  { %3086 = vmatpush3.msra.mxu1 %v707_v60  ;;  %v695_v1 = vmul.f32 %v3287_v62, %v3275_v35  ;;  %v2836_v60 = vld [vmem:[%s4021_s7] ss:$0 sm:$0xff] }
 0x3b2   :  { %3087 = vmatprep.subr.mxu1 %v705_v61 }
 0x3b3   :  { %3088 = vmatpush3.msra.mxu1 %v705_v61 }
 0x3b4   :  { %v3289_v63 = vpop.eup %3288  ;;  %3092 = vmatprep.subr.msk.mxu1 %vm86_vm0, %v3538_v28 }
 0x3b5   :  { %v693_v0 = vmul.f32 %v3289_v63, %v3277_v38 }
 0x3b7   :  { %3089 = vmatprep.mubr.msk.f32.mxu1 %vm265_vm1, %v693_v0 }
 0x3b8   :  { %3090 = vmatmul.mubr.msk.f32.vlgmr.msra.gmra.mxu1 %vm265_vm1, %v695_v1 }
 0x3b9   :  { %3093 = vmatpush3.xpose.msk.msra.mxu1 %vm86_vm0, %v3538_v28  ;;  %3096 = vmatprep.mubr.msk.f32.mxu1 %vm86_vm0, %v797_v2 }
 0x3ba   :  { %3094 = vmatprep.subr.msk.mxu1 %vm86_vm0, %v3548_v29 }
 0x3bd   :  { %3095 = vmatpush3.xpose.msk.msra.mxu1 %vm86_vm0, %v3548_v29 }
 0x3c0   :  { %3097 = vmatmul.mubr.msk.f32.vlgmr.msra.gmra.mxu1 %vm86_vm0, %v798_v4 }
 0x46c   :  { %v3070_v6 = vpop.f32.mrf.mxu1 }
 0x46e   :  { %v489_v8 = vpop.f32.mrf.mxu1 }
 0x470   :  { %v3077_v10 = vpop.f32.mrf.mxu1 }
 0x471   :  { %v584_v11 = vadd.f32 %v3077_v10, %v3070_v6 }
 0x472   :  { %v578_v12 = vpop.f32.mrf.mxu1 }
 0x473   :  { %v579_v13 = vadd.f32 %v578_v12, %v489_v8 }
 0x478   :  { %v3091_v28 = vpop.f32.mrf.mxu1 }
 0x479   :  { %v792_v14 = vadd.f32 %v3091_v28, %v584_v11 }
 0x47a   :  { %v782_v17 = vpop.f32.mrf.mxu1 }
 0x47b   :  { %v791_v18 = vadd.f32 %v782_v17, %v579_v13 }
 0x480   :  { %v3098_v19 = vpop.f32.mrf.mxu1 }
 0x481   :  { %v877_v20 = vadd.f32 %v3098_v19, %v3581_v34  ;;  %v1140_v19 = vld [vmem:[%s4022_s8 + $0x10] sm:$0xff] }
 0x482   :  { %v871_v22 = vpop.f32.mrf.mxu1 }
 0x483   :  { %v872_v29 = vadd.f32 %v871_v22, %v3586_v37  ;;  %v883_v26 = vsel %vm265_vm1, %v877_v20, -inf  ;;  %v1138_v22 = vld [vmem:[%s4022_s8] sm:$0xff] }
 0x484   :  { %884 = vmax.xlane.f32.xlu0 %v883_v26 }
 0x485   :  { %v880_v27 = vsel %vm265_vm1, %v872_v29, -inf }
 0x486   :  { %881 = vmax.xlane.f32.xlu1 %v880_v27 }
 0x49a   :  { %903 = vrot.lane.b32.xlu0 %v3515_v16, %s3369_s22 }
 0x50d   :  { %v885_v30 = vpop.xlane.xlu0 %884 }
 0x50e   :  { %v887_v31 = vsub.f32 %v877_v20, %v885_v30  ;;  %v1139_v20 = vld [vmem:[%s4022_s8 + $0x8] sm:$0xff] }
 0x50f   :  { %v882_v32 = vpop.xlane.xlu1 %881 }
 0x510   :  { %v890_v33 = vmul.f32 1.442695, %v887_v31  ;;  %v886_v35 = vsub.f32 %v872_v29, %v882_v32 }
 0x511   :  { %v3666_v36 = vpop.permute.xlu0 %903 }
 0x512   :  { %3290 = vpow2.f32 %v890_v33  ;;  %v888_v38 = vmul.f32 1.442695, %v886_v35  ;;  %v906_v39 = vmul.f32 %v3666_v36, %v3522_v23  ;;  %v907_v44 = vmul.f32 %v3666_v36, %v3520_v21  ;;  %v1002_v23 = vld [vmem:[%s4020_s6 + $0x18] sm:$0xff]  ;;  %v2839_v35 = vld [vmem:[%s4026_s12] ss:$0 sm:$0xff] }
 0x513   :  { %3106 = vmatprep.subr.mxu0 %v1002_v23 }
 0x514   :  { %3292 = vpow2.f32 %v888_v38  ;;  %910 = vrot.lane.b32.xlu0 %v906_v39, %s3369_s22  ;;  %3107 = vmatpush3.msra.mxu0 %v1002_v23  ;;  %v2840_v39 = vld [vmem:[%s4027_s13] ss:$0 sm:$0xff] }
 0x515   :  { %3108 = vmatprep.subr.mxu0 %v1001_v52 }
 0x516   :  { %3109 = vmatpush3.msra.mxu0 %v1001_v52 }
 0x517   :  { %3110 = vmatprep.subr.mxu0 %v1000_v53 }
 0x518   :  { %3111 = vmatpush3.msra.mxu0 %v1000_v53 }
 0x519   :  { %3112 = vmatprep.subr.mxu0 %v999_v54 }
 0x51a   :  { %3113 = vmatpush3.msra.mxu0 %v999_v54 }
 0x51f   :  { %v3291_v40 = vpop.eup %3290 }
 0x520   :  { %v895_v41 = vsel %vm265_vm1, %v3291_v40, 0.0 }
 0x521   :  { %v3293_v42 = vpop.eup %3292  ;;  %896 = vadd.xlane.f32.xlu1 %v895_v41 }
 0x522   :  { %v892_v43 = vsel %vm265_vm1, %v3293_v42, 0.0 }
 0x525   :  { %893 = vadd.xlane.f32.xlu1 %v892_v43 }
 0x536   :  { %912 = vrot.lane.b32.xlu1 %v907_v44, %s3369_s22 }
 0x586   :  { %v911_v48 = vpop.permute.xlu0 %910 }
 0x5aa   :  { %v897_v45 = vpop.xlane.xlu1 %896 }
 0x5ab   :  { %3294 = vrcp.f32 %v897_v45  ;;  %v1235_v45 = vld [vmem:[%s4024_s10 + $0x18] sm:$0xff] }
 0x5ac   :  { %3128 = vmatprep.subr.mxu0 %v1235_v45 }
 0x5ae   :  { %v894_v46 = vpop.xlane.xlu1 %893 }
 0x5af   :  { %3296 = vrcp.f32 %v894_v46  ;;  %v1234_v46 = vld [vmem:[%s4024_s10 + $0x10] sm:$0xff] }
 0x5b2   :  { %v913_v47 = vpop.permute.xlu1 %912 }
 0x5b3   :  { %3099 = vmatprep.subr.mxu1 %v913_v47 }
 0x5b4   :  { %3100 = vmatpush3.msra.mxu1 %v913_v47  ;;  %v1233_v47 = vld [vmem:[%s4024_s10 + $0x8] sm:$0xff] }
 0x5b5   :  { %3101 = vmatprep.subr.mxu1 %v911_v48 }
 0x5b6   :  { %3102 = vmatpush3.msra.mxu1 %v911_v48  ;;  %v1232_v48 = vld [vmem:[%s4024_s10] sm:$0xff] }
 0x5b8   :  { %v3295_v49 = vpop.eup %3294 }
 0x5b9   :  { %v901_v51 = vmul.f32 %v3295_v49, %v3291_v40  ;;  %v2841_v49 = vld [vmem:[%s4023_s9] ss:$0 sm:$0xff] }
 0x5bc   :  { %v3297_v21 = vpop.eup %3296 }
 0x5bd   :  { %v899_v50 = vmul.f32 %v3297_v21, %v3293_v42 }
 0x5bf   :  { %3103 = vmatprep.mubr.msk.f32.mxu1 %vm265_vm1, %v899_v50 }
 0x5c0   :  { %3104 = vmatmul.mubr.msk.f32.vlgmr.msra.gmra.mxu1 %vm265_vm1, %v901_v51 }
 0x680   :  { %v3105_v55 = vpop.f32.mrf.mxu1 }
 0x681   :  { %v998_v59 = vadd.f32 %v3105_v55, %v792_v14  ;;  %v2844_v55 = vld [vmem:[%s4025_s11] ss:$0 sm:$0xff] }
 0x682   :  { %v988_v56 = vpop.f32.mrf.mxu1 }
 0x683   :  { %v997_v58 = vadd.f32 %v988_v56, %v791_v18 }
 0x685   :  { %3114 = vmatprep.mubr.msk.f32.mxu0 %vm86_vm0, %v997_v58 }
 0x686   :  { %3115 = vmatmul.mubr.msk.f32.vlgmr.msra.gmra.mxu0 %vm86_vm0, %v998_v59 }
 0x687   :  { %3129 = vmatpush3.msra.mxu0 %v1235_v45 }
 0x688   :  { %3130 = vmatprep.subr.mxu0 %v1234_v46 }
 0x689   :  { %3131 = vmatpush3.msra.mxu0 %v1234_v46 }
 0x68a   :  { %3132 = vmatprep.subr.mxu0 %v1233_v47 }
 0x68b   :  { %3133 = vmatpush3.msra.mxu0 %v1233_v47 }
 0x68c   :  { %3134 = vmatprep.subr.mxu0 %v1232_v48 }
 0x68d   :  { %3135 = vmatpush3.msra.mxu0 %v1232_v48 }
 0x746   :  { %v3116_v61 = vpop.f32.mrf.mxu0 }
 0x747   :  { %v1088_v62 = vadd.f32 %v3116_v61, %v2836_v60 }
 0x748   :  { %v1082_v63 = vpop.f32.mrf.mxu0 }
 0x749   :  { %v1083_v0 = vadd.f32 %v2836_v60, %v1082_v63  ;;  %v1092_v1 = vadd.f32 %v1088_v62, %v3506_v9 }
 0x74b   :  { %v1098_v2 = vsel %vm86_vm0, %v1092_v1, 0.0  ;;  %v1091_v4 = vadd.f32 %v1083_v0, %v3493_v5  ;;  %v1141_v5 = vld [vmem:[%s4022_s8 + $0x18] sm:$0xff] }
 0x74c   :  { %1099 = vadd.xlane.f32.xlu1 %v1098_v2  ;;  %3117 = vmatprep.subr.mxu1 %v1141_v5 }
 0x74d   :  { %v1095_v6 = vsel %vm86_vm0, %v1091_v4, 0.0  ;;  %3118 = vmatpush3.msra.mxu1 %v1141_v5 }
 0x74e   :  { %1096 = vadd.xlane.f32.xlu0 %v1095_v6  ;;  %3119 = vmatprep.subr.mxu1 %v1140_v19 }
 0x74f   :  { %3120 = vmatpush3.msra.mxu1 %v1140_v19 }
 0x750   :  { %3121 = vmatprep.subr.mxu1 %v1139_v20 }
 0x751   :  { %3122 = vmatpush3.msra.mxu1 %v1139_v20 }
 0x752   :  { %3123 = vmatprep.subr.mxu1 %v1138_v22 }
 0x753   :  { %3124 = vmatpush3.msra.mxu1 %v1138_v22 }
 0x7d5   :  { %v1100_v8 = vpop.xlane.xlu1 %1099 }
 0x7d6   :  { %v1103_v10 = vmul.f32 0.03125, %v1100_v8 }
 0x7d7   :  { %v1097_v11 = vpop.xlane.xlu0 %1096 }
 0x7d8   :  { %v1102_v12 = vmul.f32 0.03125, %v1097_v11  ;;  %v1105_v13 = vsub.f32 %v1092_v1, %v1103_v10 }
 0x7da   :  { %v1104_v28 = vsub.f32 %v1091_v4, %v1102_v12  ;;  %v1107_v18 = vmul.f32 %v1105_v13, %v1105_v13 }
 0x7dc   :  { %v1106_v14 = vmul.f32 %v1104_v28, %v1104_v28  ;;  %v1111_v9 = vsel %vm86_vm0, %v1107_v18, 0.0  ;;  %v2850_v18 = vld [vmem:[%s4044_s23 + $0x28] sm:$0xff] }
 0x7de   :  { %v1108_v17 = vsel %vm86_vm0, %v1106_v14, 0.0  ;;  %v2852_v14 = vld [vmem:[%s4044_s23 + $0x38] sm:$0xff] }
 0x7df   :  { %1109 = vadd.xlane.f32.xlu0 %v1108_v17  ;;  %v2851_v17 = vld [vmem:[%s4044_s23 + $0x30] sm:$0xff]  ;;  %3139 = vmatprep.subr.mxu1 %v2852_v14 }
 0x7e3   :  { %1112 = vadd.xlane.f32.xlu0 %v1111_v9  ;;  %v2849_v9 = vld [vmem:[%s4044_s23 + $0x20] sm:$0xff] }
 0x868   :  { %v1110_v29 = vpop.xlane.xlu0 %1109 }
 0x869   :  { %v1114_v26 = vmul.f32 0.03125, %v1110_v29 }
 0x86b   :  { %v1116_v27 = vadd.f32 1e-05, %v1114_v26 }
 0x86c   :  { %v1113_v30 = vpop.xlane.xlu0 %1112 }
 0x86d   :  { %3298 = vrsqrt.f32 %v1116_v27  ;;  %v1115_v31 = vmul.f32 0.03125, %v1113_v30  ;;  %v2847_v30 = vld [vmem:[%s4028_s14] ss:$0 sm:$0xff] }
 0x86f   :  { %v1117_v32 = vadd.f32 1e-05, %v1115_v31 }
 0x871   :  { %3300 = vrsqrt.f32 %v1117_v32 }
 0x87a   :  { %v3299_v33 = vpop.eup %3298 }
 0x87b   :  { %v1120_v38 = vmul.f32 %v3299_v33, %v1104_v28 }
 0x87d   :  { %v1128_v40 = vmul.f32 %v2839_v35, %v1120_v38  ;;  %v2848_v38 = vld [vmem:[%s4029_s15] ss:$0 sm:$0xff] }
 0x87e   :  { %v3301_v41 = vpop.eup %3300 }
 0x87f   :  { %v1121_v42 = vmul.f32 %v3301_v41, %v1105_v13  ;;  %v1136_v43 = vadd.f32 %v2840_v39, %v1128_v40 }
 0x881   :  { %v1129_v44 = vmul.f32 %v2839_v35, %v1121_v42  ;;  %3125 = vmatprep.mubr.msk.f32.mxu1 %vm86_vm0, %v1136_v43  ;;  %v2854_v42 = vld [vmem:[%s4019_s5 + $0x1] ss:$0 sm:$0xff] }
 0x883   :  { %v1137_v23 = vadd.f32 %v2840_v39, %v1129_v44 }
 0x885   :  { %3126 = vmatmul.mubr.msk.f32.vlgmr.msra.gmra.mxu1 %vm86_vm0, %v1137_v23 }
 0x886   :  { %3140 = vmatpush3.msra.mxu1 %v2852_v14 }
 0x887   :  { %3141 = vmatprep.subr.mxu1 %v2851_v17 }
 0x888   :  { %3142 = vmatpush3.msra.mxu1 %v2851_v17 }
 0x889   :  { %3143 = vmatprep.subr.mxu1 %v2850_v18 }
 0x88a   :  { %3144 = vmatpush3.msra.mxu1 %v2850_v18 }
 0x88b   :  { %3145 = vmatprep.subr.mxu1 %v2849_v9 }
 0x88c   :  { %3146 = vmatpush3.msra.mxu1 %v2849_v9 }
 0x945   :  { %v3127_v21 = vpop.f32.mrf.mxu1 }
 0x946   :  { %v1227_v50 = vadd.f32 %v3127_v21, %v2841_v49 }
 0x947   :  { %v1221_v51 = vpop.f32.mrf.mxu1 }
 0x948   :  { %v1222_v52 = vadd.f32 %v2841_v49, %v1221_v51  ;;  %v1231_v54 = vmax.f32 %v1227_v50, 0.0 }
 0x94a   :  { %v1230_v53 = vmax.f32 %v1222_v52, 0.0 }
 0x94c   :  { %3136 = vmatprep.mubr.msk.f32.mxu0 %vm86_vm0, %v1230_v53 }
 0x94d   :  { %3137 = vmatmul.mubr.msk.f32.vlgmr.msra.gmra.mxu0 %vm86_vm0, %v1231_v54 }
 0xa0d   :  { %v3138_v56 = vpop.f32.mrf.mxu0 }
 0xa0e   :  { %v1321_v58 = vadd.f32 %v3138_v56, %v2844_v55 }
 0xa0f   :  { %v1315_v59 = vpop.f32.mrf.mxu0 }
 0xa10   :  { %v1316_v60 = vadd.f32 %v2844_v55, %v1315_v59  ;;  %v1325_v61 = vadd.f32 %v1321_v58, %v1137_v23 }
 0xa12   :  { %v1331_v62 = vsel %vm86_vm0, %v1325_v61, 0.0  ;;  %v1324_v63 = vadd.f32 %v1316_v60, %v1136_v43 }
 0xa13   :  { %1332 = vadd.xlane.f32.xlu0 %v1331_v62 }
 0xa14   :  { %v1328_v0 = vsel %vm86_vm0, %v1324_v63, 0.0 }
 0xa15   :  { %1329 = vadd.xlane.f32.xlu1 %v1328_v0 }
 0xa9c   :  { %v1333_v1 = vpop.xlane.xlu0 %1332 }
 0xa9d   :  { %v1335_v2 = vmul.f32 0.03125, %v1333_v1 }
 0xa9e   :  { %v1330_v4 = vpop.xlane.xlu1 %1329 }
 0xa9f   :  { %v1337_v6 = vsub.f32 %v1325_v61, %v1335_v2  ;;  %v1334_v8 = vmul.f32 0.03125, %v1330_v4 }
 0xaa1   :  { %v1336_v10 = vsub.f32 %v1324_v63, %v1334_v8  ;;  %v1339_v11 = vmul.f32 %v1337_v6, %v1337_v6 }
 0xaa3   :  { %v1343_v12 = vsel %vm86_vm0, %v1339_v11, 0.0  ;;  %v1338_v13 = vmul.f32 %v1336_v10, %v1336_v10 }
 0xaa4   :  { %1344 = vadd.xlane.f32.xlu0 %v1343_v12 }
 0xaa5   :  { %v1340_v28 = vsel %vm86_vm0, %v1338_v13, 0.0 }
 0xaa6   :  { %1341 = vadd.xlane.f32.xlu1 %v1340_v28 }
 0xb2d   :  { %v1345_v5 = vpop.xlane.xlu0 %1344 }
 0xb2e   :  { %v1347_v19 = vmul.f32 0.03125, %v1345_v5 }
 0xb2f   :  { %v1342_v20 = vpop.xlane.xlu1 %1341 }
 0xb30   :  { %v1349_v22 = vadd.f32 1e-05, %v1347_v19  ;;  %v1346_v29 = vmul.f32 0.03125, %v1342_v20 }
 0xb32   :  { %3302 = vrsqrt.f32 %v1349_v22  ;;  %v1348_v26 = vadd.f32 1e-05, %v1346_v29 }
 0xb34   :  { %3304 = vrsqrt.f32 %v1348_v26 }
 0xb3f   :  { %v3303_v27 = vpop.eup %3302 }
 0xb40   :  { %v1353_v31 = vmul.f32 %v3303_v27, %v1337_v6 }
 0xb41   :  { %v3305_v32 = vpop.eup %3304 }
 0xb42   :  { %v1352_v33 = vmul.f32 %v3305_v32, %v1336_v10  ;;  %v1361_v35 = vmul.f32 %v2847_v30, %v1353_v31 }
 0xb44   :  { %v1360_v39 = vmul.f32 %v2847_v30, %v1352_v33  ;;  %v3765_v41 = vadd.f32 %v2848_v38, %v1361_v35 }
 0xb46   :  { %v3763_v40 = vadd.f32 %v2848_v38, %v1360_v39 }
 0xb48   :  { %3147 = vmatprep.mubr.msk.f32.mxu1 %vm86_vm0, %v3763_v40 }
 0xb49   :  { %3148 = vmatmul.mubr.msk.f32.vlgmr.msra.gmra.mxu1 %vm86_vm0, %v3765_v41 }
 0xc09   :  { %v3149_v43 = vpop.f32.mrf.mxu1 }
 0xc0a   :  { %v3774_v44 = vadd.f32 %v3149_v43, %v2854_v42 }
 0xc0b   :  { %v1455_v23 = vpop.f32.mrf.mxu1 }
 0xc0c   :  { %v3776_v45 = vadd.f32 %v2854_v42, %v1455_v23  ;;  %1470 = vrot.lane.b32.xlu1 %v3774_v44, %s3368_s4  ;;  %v1465_v21 = vmul.f32 %v3774_v44, %v3526_v24  ;;  %v1582_v50 = vmul.f32 %v3774_v44, %v3528_v25  ;;  %v1687_v2 = vmul.f32 %v3774_v44, %v3606_v57 }
 0xc0d   :  { %v1867_v22 = vmul.f32 %v3774_v44, %v3513_v15 }
 0xc0e   :  { %1468 = vrot.lane.b32.xlu0 %v3776_v45, %s3368_s4  ;;  %v1464_v46 = vmul.f32 %v3776_v45, %v3526_v24  ;;  %v1581_v47 = vmul.f32 %v3776_v45, %v3528_v25  ;;  %v1686_v4 = vmul.f32 %v3776_v45, %v3606_v57  ;;  %v1866_v20 = vmul.f32 %v3776_v45, %v3513_v15 }
 0xc10   :  { %3154 = vmatprep.mubr.msk.f32.mxu0 %vm86_vm0, %v1464_v46  ;;  %3161 = vmatprep.mubr.msk.f32.mxu1 %vm86_vm0, %v1581_v47 }
 0xc7e   :  { %v3788_v48 = vpop.permute.xlu1 %1470 }
 0xc7f   :  { %3150 = vmatprep.subr.msk.mxu0 %vm86_vm0, %v3788_v48  ;;  %3157 = vmatprep.subr.msk.mxu1 %vm86_vm0, %v3788_v48 }
 0xc80   :  { %3151 = vmatpush3.xpose.msk.msra.mxu0 %vm86_vm0, %v3788_v48  ;;  %3158 = vmatpush3.xpose.msk.msra.mxu1 %vm86_vm0, %v3788_v48  ;;  %v3798_v49 = vpop.permute.xlu0 %1468 }
 0xc81   :  { %3152 = vmatprep.subr.msk.mxu0 %vm86_vm0, %v3798_v49  ;;  %3159 = vmatprep.subr.msk.mxu1 %vm86_vm0, %v3798_v49 }
 0xc84   :  { %3153 = vmatpush3.xpose.msk.msra.mxu0 %vm86_vm0, %v3798_v49  ;;  %3160 = vmatpush3.xpose.msk.msra.mxu1 %vm86_vm0, %v3798_v49 }
 0xc87   :  { %3155 = vmatmul.mubr.msk.f32.vlgmr.msra.gmra.mxu0 %vm86_vm0, %v1465_v21  ;;  %3162 = vmatmul.mubr.msk.f32.vlgmr.msra.gmra.mxu1 %vm86_vm0, %v1582_v50 }
 0xd47   :  { %v3163_v51 = vpop.f32.mrf.mxu1  ;;  %v3156_v6 = vpop.f32.mrf.mxu0 }
 0xd48   :  { %v1661_v52 = vadd.f32 %v3163_v51, %v3581_v34  ;;  %v1554_v10 = vadd.f32 %v3156_v6, %v3581_v34 }
 0xd49   :  { %v1655_v53 = vpop.f32.mrf.mxu1  ;;  %v1548_v8 = vpop.f32.mrf.mxu0 }
 0xd4a   :  { %v1656_v54 = vadd.f32 %v1655_v53, %v3586_v37  ;;  %v1667_v55 = vsel %vm265_vm1, %v1661_v52, -inf  ;;  %v1549_v11 = vadd.f32 %v1548_v8, %v3586_v37  ;;  %v1560_v12 = vsel %vm265_vm1, %v1554_v10, -inf }
 0xd4b   :  { %1668 = vmax.xlane.f32.xlu0 %v1667_v55 }
 0xd4c   :  { %v1664_v56 = vsel %vm265_vm1, %v1656_v54, -inf  ;;  %v1557_v13 = vsel %vm265_vm1, %v1549_v11, -inf }
 0xd4d   :  { %1665 = vmax.xlane.f32.xlu1 %v1664_v56 }
 0xdd4   :  { %v1669_v24 = vpop.xlane.xlu0 %1668 }
 0xdd5   :  { %v1671_v58 = vsub.f32 %v1661_v52, %v1669_v24 }
 0xdd6   :  { %v1666_v59 = vpop.xlane.xlu1 %1665 }
 0xdd7   :  { %v1674_v25 = vmul.f32 1.442695, %v1671_v58  ;;  %v1670_v60 = vsub.f32 %v1656_v54, %v1666_v59 }
 0xdd9   :  { %3306 = vpow2.f32 %v1674_v25  ;;  %v1672_v61 = vmul.f32 1.442695, %v1670_v60 }
 0xddb   :  { %3308 = vpow2.f32 %v1672_v61 }
 0xde6   :  { %v3307_v62 = vpop.eup %3306 }
 0xde7   :  { %v1679_v63 = vsel %vm265_vm1, %v3307_v62, 0.0 }
 0xde8   :  { %v3309_v0 = vpop.eup %3308  ;;  %1680 = vadd.xlane.f32.xlu0 %v1679_v63 }
 0xde9   :  { %v1676_v1 = vsel %vm265_vm1, %v3309_v0, 0.0 }
 0xdea   :  { %1677 = vadd.xlane.f32.xlu1 %v1676_v1  ;;  %v1579_v1 = vmul.f32 %v3776_v45, %v3618_v3 }
 0xdfb   :  { %1692 = vrot.lane.b32.xlu1 %v1687_v2, %s3369_s22 }
 0xdfe   :  { %1690 = vrot.lane.b32.xlu0 %v1686_v4, %s3369_s22 }
 0xe1d   :  { %1561 = vmax.xlane.f32.xlu0 %v1560_v12 }
 0xe1f   :  { %1558 = vmax.xlane.f32.xlu1 %v1557_v13 }
 0xe71   :  { %v1681_v28 = vpop.xlane.xlu0 %1680 }
 0xe72   :  { %3310 = vrcp.f32 %v1681_v28 }
 0xe73   :  { %v1678_v14 = vpop.xlane.xlu1 %1677 }
 0xe74   :  { %3312 = vrcp.f32 %v1678_v14 }
 0xe75   :  { %v1691_v57 = vpop.permute.xlu0 %1690 }
 0xe77   :  { %v1693_v17 = vpop.permute.xlu1 %1692 }
 0xe78   :  { %3164 = vmatprep.subr.mxu0 %v1693_v17 }
 0xe79   :  { %3165 = vmatpush3.msra.mxu0 %v1693_v17  ;;  %v2064_v17 = vmul.f32 %v3776_v45, %v3515_v16 }
 0xe7a   :  { %3166 = vmatprep.subr.mxu0 %v1691_v57 }
 0xe7b   :  { %3167 = vmatpush3.msra.mxu0 %v1691_v57  ;;  %v2065_v57 = vmul.f32 %v3774_v44, %v3515_v16  ;;  %v3345_v16 = vld [vmem:[%s4048_s0] sm:$0xff] }
 0xe7c   :  { %3178 = vmatprep.subr.msk.mxu0 %vm86_vm0, %v3788_v48 }
 0xe7f   :  { %v3311_v18 = vpop.eup %3310 }
 0xe80   :  { %v1685_v19 = vmul.f32 %v3311_v18, %v3307_v62 }
 0xe81   :  { %v3313_v9 = vpop.eup %3312 }
 0xe82   :  { %v1683_v5 = vmul.f32 %v3313_v9, %v3309_v0  ;;  %v1971_v0 = vmul.f32 %v3776_v45, %v3624_v7 }
 0xe84   :  { %3168 = vmatprep.mubr.msk.f32.mxu0 %vm265_vm1, %v1683_v5 }
 0xe85   :  { %3169 = vmatmul.mubr.msk.f32.vlgmr.msra.gmra.mxu0 %vm265_vm1, %v1685_v19 }
 0xe86   :  { %3179 = vmatpush3.xpose.msk.msra.mxu0 %vm86_vm0, %v3788_v48  ;;  %3182 = vmatprep.mubr.msk.f32.mxu0 %vm86_vm0, %v1866_v20 }
 0xe87   :  { %3180 = vmatprep.subr.msk.mxu0 %vm86_vm0, %v3798_v49 }
 0xe8a   :  { %3181 = vmatpush3.xpose.msk.msra.mxu0 %vm86_vm0, %v3798_v49 }
 0xe8d   :  { %3183 = vmatmul.mubr.msk.f32.vlgmr.msra.gmra.mxu0 %vm86_vm0, %v1867_v22 }
 0xea6   :  { %v1562_v29 = vpop.xlane.xlu0 %1561 }
 0xea7   :  { %v1564_v27 = vsub.f32 %v1554_v10, %v1562_v29 }
 0xea8   :  { %v1559_v26 = vpop.xlane.xlu1 %1558 }
 0xea9   :  { %v1563_v30 = vsub.f32 %v1549_v11, %v1559_v26  ;;  %v1567_v31 = vmul.f32 1.442695, %v1564_v27 }
 0xeab   :  { %v1565_v32 = vmul.f32 1.442695, %v1563_v30  ;;  %3314 = vpow2.f32 %v1567_v31 }
 0xead   :  { %3316 = vpow2.f32 %v1565_v32 }
 0xeb8   :  { %v3315_v23 = vpop.eup %3314 }
 0xeb9   :  { %v1572_v21 = vsel %vm265_vm1, %v3315_v23, 0.0 }
 0xeba   :  { %v3317_v47 = vpop.eup %3316 }
 0xebb   :  { %v1569_v50 = vsel %vm265_vm1, %v3317_v47, 0.0 }
 0xf45   :  { %v3846_v33 = vpop.f32.mrf.mxu0 }
 0xf47   :  { %v3848_v35 = vpop.f32.mrf.mxu0 }
 0xf4d   :  { %v3184_v38 = vpop.f32.mrf.mxu0 }
 0xf4e   :  { %v1946_v39 = vadd.f32 %v3184_v38, %v3581_v34  ;;  %v1580_v34 = vmul.f32 %v3774_v44, %v3618_v3 }
 0xf4f   :  { %v1940_v42 = vpop.f32.mrf.mxu0 }
 0xf50   :  { %v1941_v15 = vadd.f32 %v1940_v42, %v3586_v37  ;;  %v1952_v43 = vsel %vm265_vm1, %v1946_v39, -inf  ;;  %v1972_v37 = vmul.f32 %v3774_v44, %v3624_v7 }
 0xf51   :  { %1953 = vmax.xlane.f32.xlu0 %v1952_v43 }
 0xf52   :  { %v1949_v46 = vsel %vm265_vm1, %v1941_v15, -inf }
 0xf53   :  { %1950 = vmax.xlane.f32.xlu1 %v1949_v46 }
 0xf55   :  { %1573 = vadd.xlane.f32.xlu0 %v1572_v21 }
 0xf57   :  { %1570 = vadd.xlane.f32.xlu1 %v1569_v50 }
 0xf68   :  { %1781 = vrot.lane.b32.xlu1 %v1580_v34, %s3369_s22  ;;  %v2169_v34 = vmul.f32 %v3776_v45, %v3666_v36  ;;  %v2882_v45 = vld [vmem:[%s4020_s6 + $0x28] sm:$0xff] }
 0xf6c   :  { %1977 = vrot.lane.b32.xlu1 %v1972_v37, %s3369_s22 }
 0xfda   :  { %v1954_v51 = vpop.xlane.xlu0 %1953 }
 0xfdb   :  { %v1956_v52 = vsub.f32 %v1946_v39, %v1954_v51 }
 0xfdc   :  { %v1951_v53 = vpop.xlane.xlu1 %1950 }
 0xfdd   :  { %v1959_v54 = vmul.f32 1.442695, %v1956_v52  ;;  %v1955_v55 = vsub.f32 %v1941_v15, %v1951_v53  ;;  %v2884_v53 = vld [vmem:[%s4020_s6 + $0x38] sm:$0xff] }
 0xfde   :  { %v1574_v2 = vpop.xlane.xlu0 %1573 }
 0xfdf   :  { %3318 = vpow2.f32 %v1959_v54  ;;  %v1957_v56 = vmul.f32 1.442695, %v1955_v55 }
 0xfe0   :  { %v1571_v24 = vpop.xlane.xlu1 %1570 }
 0xfe1   :  { %3320 = vpow2.f32 %v1957_v56 }
 0xfe2   :  { %3322 = vrcp.f32 %v1571_v24 }
 0xfe3   :  { %3324 = vrcp.f32 %v1574_v2 }
 0xfe4   :  { %v1782_v58 = vpop.permute.xlu1 %1781 }
 0xfe5   :  { %3171 = vmatprep.subr.mxu1 %v1782_v58 }
 0xfe6   :  { %3172 = vmatpush3.msra.mxu1 %v1782_v58  ;;  %v2881_v58 = vld [vmem:[%s4020_s6 + $0x20] sm:$0xff] }
 0xfe8   :  { %v1978_v4 = vpop.permute.xlu1 %1977 }
 0xfec   :  { %v3319_v59 = vpop.eup %3318 }
 0xfed   :  { %v1964_v25 = vsel %vm265_vm1, %v3319_v59, 0.0 }
 0xfee   :  { %v3321_v60 = vpop.eup %3320  ;;  %1965 = vadd.xlane.f32.xlu0 %v1964_v25 }
 0xfef   :  { %v3323_v61 = vpop.eup %3322  ;;  %v1961_v62 = vsel %vm265_vm1, %v3321_v60, 0.0 }
 0xff0   :  { %1962 = vadd.xlane.f32.xlu1 %v1961_v62  ;;  %v1576_v63 = vmul.f32 %v3323_v61, %v3317_v47  ;;  %v3325_v8 = vpop.eup %3324  ;;  %v2886_v62 = vld [vmem:[%s4021_s7 + $0x1] ss:$0 sm:$0xff] }
 0xff1   :  { %v1578_v12 = vmul.f32 %v3325_v8, %v3315_v23 }
 0xff2   :  { %3175 = vmatprep.mubr.msk.f32.mxu1 %vm265_vm1, %v1576_v63 }
0x1001   :  { %1975 = vrot.lane.b32.xlu1 %v1971_v0, %s3369_s22 }
0x1004   :  { %1779 = vrot.lane.b32.xlu0 %v1579_v1, %s3369_s22 }
0x1077   :  { %v1966_v6 = vpop.xlane.xlu0 %1965 }
0x1078   :  { %3326 = vrcp.f32 %v1966_v6 }
0x1079   :  { %v1963_v10 = vpop.xlane.xlu1 %1962 }
0x107a   :  { %3328 = vrcp.f32 %v1963_v10 }
0x107b   :  { %v1780_v11 = vpop.permute.xlu0 %1779 }
0x107c   :  { %3173 = vmatprep.subr.mxu1 %v1780_v11 }
0x107d   :  { %3174 = vmatpush3.msra.mxu1 %v1780_v11  ;;  %v1976_v7 = vpop.permute.xlu1 %1975 }
0x107e   :  { %3176 = vmatmul.mubr.msk.f32.vlgmr.msra.gmra.mxu1 %vm265_vm1, %v1578_v12  ;;  %3185 = vmatprep.subr.mxu1 %v1978_v4 }
0x107f   :  { %3186 = vmatpush3.msra.mxu1 %v1978_v4 }
0x1080   :  { %3187 = vmatprep.subr.mxu1 %v1976_v7 }
0x1081   :  { %3188 = vmatpush3.msra.mxu1 %v1976_v7 }
0x1082   :  { %3192 = vmatprep.subr.msk.mxu1 %vm86_vm0, %v3788_v48 }
0x1085   :  { %v3327_v3 = vpop.eup %3326 }
0x1086   :  { %v1970_v14 = vmul.f32 %v3327_v3, %v3319_v59 }
0x1087   :  { %v3329_v13 = vpop.eup %3328 }
0x1088   :  { %v1968_v28 = vmul.f32 %v3329_v13, %v3321_v60 }
0x108a   :  { %3189 = vmatprep.mubr.msk.f32.mxu1 %vm265_vm1, %v1968_v28 }
0x108b   :  { %3190 = vmatmul.mubr.msk.f32.vlgmr.msra.gmra.mxu1 %vm265_vm1, %v1970_v14 }
0x108c   :  { %3193 = vmatpush3.xpose.msk.msra.mxu1 %vm86_vm0, %v3788_v48  ;;  %3196 = vmatprep.mubr.msk.f32.mxu1 %vm86_vm0, %v2064_v17 }
0x108d   :  { %3194 = vmatprep.subr.msk.mxu1 %vm86_vm0, %v3798_v49 }
0x1090   :  { %3195 = vmatpush3.xpose.msk.msra.mxu1 %vm86_vm0, %v3798_v49  ;;  %v3344_v49 = vld [vmem:[%s4048_s0 + $0x8] sm:$0xff] }
0x1093   :  { %3197 = vmatmul.mubr.msk.f32.vlgmr.msra.gmra.mxu1 %vm86_vm0, %v2065_v57 }
0x113e   :  { %v3177_v18 = vpop.f32.mrf.mxu1 }
0x113f   :  { %v1863_v5 = vadd.f32 %v3177_v18, %v3846_v33  ;;  %v2895_v18 = vld [vmem:[%s4022_s8 + $0x30] sm:$0xff] }
0x1140   :  { %v1857_v9 = vpop.f32.mrf.mxu1 }
0x1141   :  { %v1858_v48 = vadd.f32 %v1857_v9, %v3848_v35  ;;  %v2170_v35 = vmul.f32 %v3774_v44, %v3666_v36  ;;  %v2883_v36 = vld [vmem:[%s4020_s6 + $0x30] sm:$0xff]  ;;  %v2894_v9 = vld [vmem:[%s4022_s8 + $0x28] sm:$0xff]  ;;  %s3372_s6 = smov [#allocation2]  }
0x1142   :  { %s2801_s7 = sshll.u32 %s3372_s6, 4  ;;  %s2802_s7 = int_to_ptr.vmem [resolvable:$true] %s2801_s7 }
0x1143   :  { %p3351_p1 = scmp.lt.s32.totalorder %s2802_s7, %s2802_s7 }
0x114b   :  { %v3191_v19 = vpop.f32.mrf.mxu1 }
0x114c   :  { %v2063_v20 = vadd.f32 %v3191_v19, %v1863_v5  ;;  %v2893_v5 = vld [vmem:[%s4022_s8 + $0x20] sm:$0xff] }
0x114d   :  { %v2053_v22 = vpop.f32.mrf.mxu1 }
0x114e   :  { %v2062_v29 = vadd.f32 %v2053_v22, %v1858_v48 }
0x1153   :  { %v3198_v26 = vpop.f32.mrf.mxu1 }
0x1154   :  { %v2144_v27 = vadd.f32 %v3344_v49, %v3198_v26 }
0x1155   :  { %v2138_v30 = vpop.f32.mrf.mxu1 }
0x1156   :  { %v2139_v31 = vadd.f32 %v3345_v16, %v2138_v30  ;;  %v2150_v32 = vsel %vm265_vm1, %v2144_v27, -inf }
0x1157   :  { %2151 = vmax.xlane.f32.xlu1 %v2150_v32 }
0x1158   :  { %v2147_v33 = vsel %vm265_vm1, %v2139_v31, -inf }
0x1159   :  { %2148 = vmax.xlane.f32.xlu0 %v2147_v33  ;;  %v2892_v33 = vld [vmem:[%s4027_s13 + $0x1] ss:$0 sm:$0xff] }
0x1168   :  { %2175 = vrot.lane.b32.xlu1 %v2170_v35, %s3369_s22 }
0x11e0   :  { %v2152_v38 = vpop.xlane.xlu1 %2151 }
0x11e1   :  { %v2154_v39 = vsub.f32 %v2144_v27, %v2152_v38  ;;  %v2891_v27 = vld [vmem:[%s4026_s12 + $0x1] ss:$0 sm:$0xff] }
0x11e2   :  { %v2149_v42 = vpop.xlane.xlu0 %2148 }
0x11e3   :  { %v2157_v15 = vmul.f32 1.442695, %v2154_v39  ;;  %v2153_v43 = vsub.f32 %v2139_v31, %v2149_v42  ;;  %v2904_v42 = vld [vmem:[%s4024_s10 + $0x38] sm:$0xff] }
0x11e4   :  { %v2176_v23 = vpop.permute.xlu1 %2175 }
0x11e5   :  { %3330 = vpow2.f32 %v2157_v15  ;;  %v2155_v46 = vmul.f32 1.442695, %v2153_v43  ;;  %3199 = vmatprep.subr.mxu0 %v2176_v23  ;;  %v2903_v15 = vld [vmem:[%s4024_s10 + $0x30] sm:$0xff]  ;;  %v2902_v43 = vld [vmem:[%s4024_s10 + $0x28] sm:$0xff] }
0x11e6   :  { %3200 = vmatpush3.msra.mxu0 %v2176_v23  ;;  %v2901_v23 = vld [vmem:[%s4024_s10 + $0x20] sm:$0xff] }
0x11e7   :  { %3332 = vpow2.f32 %v2155_v46  ;;  %v2898_v46 = vld [vmem:[%s4023_s9 + $0x1] ss:$0 sm:$0xff] }
0x11f2   :  { %v3331_v47 = vpop.eup %3330 }
0x11f3   :  { %v2162_v21 = vsel %vm265_vm1, %v3331_v47, 0.0 }
0x11f4   :  { %v3333_v50 = vpop.eup %3332  ;;  %2163 = vadd.xlane.f32.xlu0 %v2162_v21 }
0x11f5   :  { %v2159_v44 = vsel %vm265_vm1, %v3333_v50, 0.0 }
0x11f8   :  { %2160 = vadd.xlane.f32.xlu0 %v2159_v44 }
0x120e   :  { %2173 = vrot.lane.b32.xlu0 %v2169_v34, %s3369_s22 }
0x127d   :  { %v2164_v37 = vpop.xlane.xlu0 %2163 }
0x127e   :  { %3334 = vrcp.f32 %v2164_v37 }
0x1281   :  { %v2161_v51 = vpop.xlane.xlu0 %2160 }
0x1282   :  { %3336 = vrcp.f32 %v2161_v51 }
0x1285   :  { %v2174_v52 = vpop.permute.xlu0 %2173 }
0x1286   :  { %3201 = vmatprep.subr.mxu0 %v2174_v52 }
0x1287   :  { %3202 = vmatpush3.msra.mxu0 %v2174_v52  ;;  %v2906_v52 = vld [vmem:[%s4025_s11 + $0x1] ss:$0 sm:$0xff] }
0x1288   :  { %3206 = vmatprep.subr.mxu0 %v2884_v53 }
0x128b   :  { %v3335_v54 = vpop.eup %3334 }
0x128c   :  { %v2168_v24 = vmul.f32 %v3335_v54, %v3331_v47 }
0x128f   :  { %v3337_v55 = vpop.eup %3336 }
0x1290   :  { %v2166_v56 = vmul.f32 %v3337_v55, %v3333_v50 }
0x1292   :  { %3203 = vmatprep.mubr.msk.f32.mxu0 %vm265_vm1, %v2166_v56 }
0x1293   :  { %3204 = vmatmul.mubr.msk.f32.vlgmr.msra.gmra.mxu0 %vm265_vm1, %v2168_v24 }
0x1294   :  { %3207 = vmatpush3.msra.mxu0 %v2884_v53 }
0x1295   :  { %3208 = vmatprep.subr.mxu0 %v2883_v36 }
0x1296   :  { %3209 = vmatpush3.msra.mxu0 %v2883_v36 }
0x1297   :  { %3210 = vmatprep.subr.mxu0 %v2882_v45 }
0x1298   :  { %3211 = vmatpush3.msra.mxu0 %v2882_v45 }
0x1299   :  { %3212 = vmatprep.subr.mxu0 %v2881_v58 }
0x129a   :  { %3213 = vmatpush3.msra.mxu0 %v2881_v58 }
0x129b   :  { %3228 = vmatprep.subr.mxu0 %v2904_v42 }
0x1353   :  { %v3205_v59 = vpop.f32.mrf.mxu0 }
0x1354   :  { %v2261_v61 = vadd.f32 %v3205_v59, %v2063_v20 }
0x1355   :  { %v2251_v25 = vpop.f32.mrf.mxu0 }
0x1356   :  { %v2260_v60 = vadd.f32 %v2251_v25, %v2062_v29  ;;  %v3370_v25 = vmov 0.0  }
0x1358   :  { %3214 = vmatprep.mubr.msk.f32.mxu0 %vm86_vm0, %v2260_v60  ;;  %v2628_v60 = vld [vmem:[%s4030_s16 + $0x18] sm:$0xff] }
0x1359   :  { %3215 = vmatmul.mubr.msk.f32.vlgmr.msra.gmra.mxu0 %vm86_vm0, %v2261_v61  ;;  %v2627_v61 = vld [vmem:[%s4030_s16 + $0x10] sm:$0xff] }
0x135a   :  { %3229 = vmatpush3.msra.mxu0 %v2904_v42 }
0x135b   :  { %3230 = vmatprep.subr.mxu0 %v2903_v15 }
0x135c   :  { %3231 = vmatpush3.msra.mxu0 %v2903_v15 }
0x135d   :  { %3232 = vmatprep.subr.mxu0 %v2902_v43 }
0x135e   :  { %3233 = vmatpush3.msra.mxu0 %v2902_v43 }
0x135f   :  { %3234 = vmatprep.subr.mxu0 %v2901_v23 }
0x1360   :  { %3235 = vmatpush3.msra.mxu0 %v2901_v23 }
0x1361   :  { %3250 = vmatprep.subr.mxu0 %v3370_v25 }
0x1419   :  { %v3216_v63 = vpop.f32.mrf.mxu0 }
0x141a   :  { %v2353_v0 = vadd.f32 %v3216_v63, %v2886_v62  ;;  %v2625_v63 = vld [vmem:[%s4030_s16] sm:$0xff] }
0x141b   :  { %v2347_v1 = vpop.f32.mrf.mxu0 }
0x141c   :  { %v2348_v2 = vadd.f32 %v2886_v62, %v2347_v1  ;;  %v2357_v4 = vadd.f32 %v2353_v0, %v3765_v41  ;;  %v2626_v62 = vld [vmem:[%s4030_s16 + $0x8] sm:$0xff]  ;;  %v2713_v0 = vld [vmem:[%s4032_s18 + $0x18] sm:$0xff] }
0x141e   :  { %v2365_v6 = vsel %vm86_vm0, %v2357_v4, 0.0  ;;  %v2356_v8 = vadd.f32 %v2348_v2, %v3763_v40  ;;  %v2896_v40 = vld [vmem:[%s4022_s8 + $0x38] sm:$0xff] }
0x141f   :  { %2366 = vadd.xlane.f32.xlu0 %v2365_v6  ;;  %3217 = vmatprep.subr.mxu1 %v2896_v40 }
0x1420   :  { %v2362_v10 = vsel %vm86_vm0, %v2356_v8, 0.0  ;;  %3218 = vmatpush3.msra.mxu1 %v2896_v40 }
0x1421   :  { %2363 = vadd.xlane.f32.xlu1 %v2362_v10  ;;  %3219 = vmatprep.subr.mxu1 %v2895_v18 }
0x1422   :  { %3220 = vmatpush3.msra.mxu1 %v2895_v18  ;;  %v2915_v18 = vld [vmem:[%s4033_s19] ss:$0 sm:$0xff] }
0x1423   :  { %3221 = vmatprep.subr.mxu1 %v2894_v9 }
0x1424   :  { %3222 = vmatpush3.msra.mxu1 %v2894_v9 }
0x1425   :  { %3223 = vmatprep.subr.mxu1 %v2893_v5 }
0x1426   :  { %3224 = vmatpush3.msra.mxu1 %v2893_v5 }
0x1427   :  { %3239 = vmatprep.subr.mxu1 %v3370_v25 }
0x14a8   :  { %v2367_v11 = vpop.xlane.xlu0 %2366 }
0x14a9   :  { %v2369_v12 = vmul.f32 0.03125, %v2367_v11  ;;  %v2912_v11 = vld [vmem:[%s4029_s15 + $0x1] ss:$0 sm:$0xff] }
0x14aa   :  { %v2364_v7 = vpop.xlane.xlu1 %2363 }
0x14ab   :  { %v2371_v3 = vsub.f32 %v2357_v4, %v2369_v12  ;;  %v2368_v13 = vmul.f32 0.03125, %v2364_v7 }
0x14ad   :  { %v2370_v28 = vsub.f32 %v2356_v8, %v2368_v13  ;;  %v2373_v14 = vmul.f32 %v2371_v3, %v2371_v3  ;;  %v2911_v8 = vld [vmem:[%s4028_s14 + $0x1] ss:$0 sm:$0xff]  ;;  %v2711_v13 = vld [vmem:[%s4032_s18 + $0x8] sm:$0xff] }
0x14af   :  { %v2377_v17 = vsel %vm86_vm0, %v2373_v14, 0.0  ;;  %v2372_v57 = vmul.f32 %v2370_v28, %v2370_v28  ;;  %v2913_v14 = vld [vmem:[%s4031_s17] ss:$0 sm:$0xff] }
0x14b0   :  { %2378 = vadd.xlane.f32.xlu0 %v2377_v17 }
0x14b1   :  { %v2374_v41 = vsel %vm86_vm0, %v2372_v57, 0.0 }
0x14b2   :  { %2375 = vadd.xlane.f32.xlu1 %v2374_v41 }
0x1539   :  { %v2379_v19 = vpop.xlane.xlu0 %2378 }
0x153a   :  { %v2381_v48 = vmul.f32 0.03125, %v2379_v19 }
0x153b   :  { %v2376_v20 = vpop.xlane.xlu1 %2375 }
0x153c   :  { %v2383_v22 = vadd.f32 1e-05, %v2381_v48  ;;  %v2380_v29 = vmul.f32 0.03125, %v2376_v20 }
0x153e   :  { %3338 = vrsqrt.f32 %v2383_v22  ;;  %v2382_v26 = vadd.f32 1e-05, %v2380_v29 }
0x1540   :  { %3340 = vrsqrt.f32 %v2382_v26 }
0x154b   :  { %v3339_v49 = vpop.eup %3338 }
0x154c   :  { %v2387_v30 = vmul.f32 %v3339_v49, %v2371_v3  ;;  %v2712_v3 = vld [vmem:[%s4032_s18 + $0x10] sm:$0xff] }
0x154d   :  { %v3341_v16 = vpop.eup %3340 }
0x154e   :  { %v2386_v31 = vmul.f32 %v3341_v16, %v2370_v28  ;;  %v2395_v32 = vmul.f32 %v2891_v27, %v2387_v30  ;;  %v2710_v28 = vld [vmem:[%s4032_s18] sm:$0xff]  ;;  %s3346_s18 = scalar_lea.vmem %s2802_s7, 32 }
0x154f   :  { %p3347_p0 = scmp.ne.s32.totalorder %s2802_s7, %s3346_s18  ;;  %p3352_p2 = scmp.lt.s32.totalorder %s3346_s18, %s3346_s18 }
0x1550   :  { %v2394_v35 = vmul.f32 %v2891_v27, %v2386_v31  ;;  %v2403_v39 = vadd.f32 %v2892_v33, %v2395_v32 }
0x1551   :  { %p3353_p3 = por %p3352_p2, %p3351_p1 }
0x1552   :  { %v2402_v38 = vadd.f32 %v2892_v33, %v2394_v35 }
0x1553   :  { %p3354_p4 = pnand %p3353_p3, %p3347_p0 }
0x1554   :  { %3225 = vmatprep.mubr.msk.f32.mxu1 %vm86_vm0, %v2402_v38 }
0x1555   :  { %3226 = vmatmul.mubr.msk.f32.vlgmr.msra.gmra.mxu1 %vm86_vm0, %v2403_v39 }
0x1556   :  { %3240 = vmatpush3.msra.mxu1 %v2628_v60  ;;  %3247 = vmatprep.mubr.msk.f32.mxu1 %vm3371_vm2, %v3370_v25 }
0x1557   :  { %3241 = vmatprep.subr.mxu1 %v3370_v25 }
0x1558   :  { %3242 = vmatpush3.msra.mxu1 %v2627_v61 }
0x1559   :  { %3243 = vmatprep.subr.mxu1 %v3370_v25 }
0x155a   :  { %3244 = vmatpush3.msra.mxu1 %v2626_v62 }
0x155b   :  { %3245 = vmatprep.subr.mxu1 %v3370_v25 }
0x155c   :  { %3246 = vmatpush3.msra.mxu1 %v2625_v63 }
0x1615   :  { %v3227_v47 = vpop.f32.mrf.mxu1 }
0x1616   :  { %v2495_v21 = vadd.f32 %v3227_v47, %v2898_v46 }
0x1617   :  { %v2489_v50 = vpop.f32.mrf.mxu1 }
0x1618   :  { %v2490_v44 = vadd.f32 %v2898_v46, %v2489_v50  ;;  %v2499_v37 = vmax.f32 %v2495_v21, 0.0 }
0x161a   :  { %v2498_v34 = vmax.f32 %v2490_v44, 0.0 }
0x161c   :  { %3236 = vmatprep.mubr.msk.f32.mxu0 %vm86_vm0, %v2498_v34 }
0x161d   :  { %3237 = vmatmul.mubr.msk.f32.vlgmr.msra.gmra.mxu0 %vm86_vm0, %v2499_v37 }
0x161e   :  { %3258 = vmatprep.mubr.msk.f32.mxu0 %vm3371_vm2, %v3370_v25  ;;  %3251 = vmatpush3.msra.mxu0 %v2713_v0 }
0x161f   :  { %3252 = vmatprep.subr.mxu0 %v3370_v25 }
0x1620   :  { %3253 = vmatpush3.msra.mxu0 %v2712_v3 }
0x1621   :  { %3254 = vmatprep.subr.mxu0 %v3370_v25 }
0x1622   :  { %3255 = vmatpush3.msra.mxu0 %v2711_v13 }
0x1623   :  { %3256 = vmatprep.subr.mxu0 %v3370_v25 }
0x1624   :  { %3257 = vmatpush3.msra.mxu0 %v2710_v28 }
0x16dd   :  { %v3238_v51 = vpop.f32.mrf.mxu0 }
0x16df   :  { %v2585_v53 = vpop.f32.mrf.mxu0 }
0x16e0   :  { %v2586_v54 = vadd.f32 %v2906_v52, %v2585_v53 }
0x16e2   :  { %v2593_v55 = vadd.f32 %v2586_v54, %v2402_v38 }
0x16e4   :  { %v2598_v56 = vsel %vm86_vm0, %v2593_v55, 0.0 }
0x16e5   :  { %2599 = vadd.xlane.f32.xlu1 %v2598_v56 }
0x176e   :  { %v2600_v24 = vpop.xlane.xlu1 %2599 }
0x176f   :  { %v2601_v36 = vmul.f32 0.03125, %v2600_v24 }
0x1771   :  { %v2602_v45 = vsub.f32 %v2593_v55, %v2601_v36 }
0x1773   :  { %v2603_v58 = vmul.f32 %v2602_v45, %v2602_v45 }
0x1775   :  { %v2604_v59 = vsel %vm86_vm0, %v2603_v58, 0.0 }
0x1776   :  { %2605 = vadd.xlane.f32.xlu0 %v2604_v59 }
0x17ff   :  { %v2606_v1 = vpop.xlane.xlu0 %2605 }
0x1800   :  { %v2607_v2 = vmul.f32 0.03125, %v2606_v1 }
0x1802   :  { %v2608_v4 = vadd.f32 1e-05, %v2607_v2 }
0x1804   :  { %3342 = vrsqrt.f32 %v2608_v4 }
0x1811   :  { %v3343_v6 = vpop.eup %3342 }
0x1812   :  { %v2610_v10 = vmul.f32 %v3343_v6, %v2602_v45 }
0x1814   :  { %v2617_v12 = vmul.f32 %v2911_v8, %v2610_v10 }
0x1816   :  { %v2624_v7 = vadd.f32 %v2912_v11, %v2617_v12 }
0x1818   :  { %3248 = vmatmul.mubr.msk.f32.vlgmr.msra.gmra.mxu1 %vm86_vm0, %v2624_v7 }
0x18d8   :  { %v2705_v17 = vpop.f32.mrf.mxu1 }
0x18d9   :  { %v2706_v57 = vadd.f32 %v2913_v14, %v2705_v17 }
0x18da   :  { %v3249_v41 = vpop.f32.mrf.mxu1 }
0x18db   :  { %v2709_v40 = vmax.f32 %v2706_v57, 0.0 }
0x18dd   :  { %3259 = vmatmul.mubr.msk.f32.vlgmr.msra.gmra.mxu0 %vm86_vm0, %v2709_v40 }
0x199d   :  { %v2790_v9 = vpop.f32.mrf.mxu0 }
0x199e   :  { %v2791_v5 = vadd.f32 %v2915_v18, %v2790_v9 }
0x199f   :  { %v3260_v19 = vpop.f32.mrf.mxu0 }
0x19a0   :  { %2794 = vst [vmem:[#allocation2] sm:$0x3] %v2791_v5 }
0x19a1   :  { %3357 = shalt.err (!%p3354_p4)
}
0x19a2   :  { %2804 = dma.vmem_to_hbm [thread:$0]  %s2802_s7, 32, %s4034_s20, [#allocation3]  }
0x19a3   :  { %3366 = dma.done.wait [#allocation3], 32  }
0x19a4   :  { %3367 = vsyncadd [#allocation3], 4294967264 }
0x19a5   :  { %2808 = vsyncpa [#allocation3], 1 }

</bundles_post_ra>
